<compile_context>
chip_gen: v5e
topology: v5e:2x2
jax: 0.10.0
libtpu: 0.0.40
codegen_flags: <defaults>
</compile_context>

<pallas_src>
import math

import jax
import jax.numpy as jnp
from jax.experimental import pallas as pl
from jax.experimental.pallas import tpu as pltpu

_NEG = -1e30  # folded into the noise for padded codebook rows (never win argmax)


def _make_gvq_kernel(exact):
    """Build the kernel body.  Per grid point (V_pad = V rounded up to 128):
       x_ref (C, Tt), w_ref (V_pad, C), n_ref (V_pad, Tt)  [gumbel + bias],
       e_ref (C, V_pad), q_ref (C, Tt), p_ref (Tt, V_pad).
    """
    cd = jnp.float32 if exact else jnp.bfloat16  # matmul input dtype

    def kernel(x_ref, w_ref, n_ref, e_ref, q_ref, p_ref):
        # 1x1-conv projection on the MXU: logits[v, t] = sum_c W[v, c] * x[c, t]
        logits = jnp.dot(w_ref[...].astype(cd), x_ref[...].astype(cd),
                         preferred_element_type=jnp.float32)          # (Vp, Tt)
        # bias is pre-folded into the streamed noise; the "/ tau" of
        # gumbel_softmax(hard=True) is dropped (argmax is invariant to tau > 0).
        y = logits + n_ref[...].astype(jnp.float32)                   # (Vp, Tt)
        y_max = jnp.max(y, axis=0, keepdims=True)                     # (1, Tt)

        if exact:
            # first-occurrence argmax (matches torch.argmax) for bit-exact checks
            v_pad = y.shape[0]
            row = jax.lax.broadcasted_iota(jnp.int32, y.shape, 0)
            idx = jnp.min(jnp.where(y == y_max, row, v_pad),
                          axis=0, keepdims=True)                      # (1, Tt)
            one_hot = (row == idx).astype(jnp.float32)                # (Vp, Tt)
        else:
            # single-reduction argmax; exact ties are measure-zero with
            # continuous Gumbel noise (padded rows sit at -1e30, never match).
            one_hot = (y == y_max).astype(jnp.float32)                # (Vp, Tt)

        # codebook lookup as an MXU matmul: quantized[c,t] = sum_v E^T[c,v]*oh[v,t]
        q_ref[...] = jnp.dot(e_ref[...], one_hot.astype(e_ref.dtype),
                             preferred_element_type=jnp.float32).astype(q_ref.dtype)
        # lane-dense (Tt, V_pad) one-hot store (bf16 target: 0/1 exact, half bytes)
        p_ref[...] = jnp.transpose(one_hot).astype(p_ref.dtype)

    return kernel


_GVQ_KERNEL_EXACT = _make_gvq_kernel(True)
_GVQ_KERNEL_FAST = _make_gvq_kernel(False)


def _pick_t_tile(T):
    for cand in (1024, 512, 256, 128):
        if T % cand == 0:
            return cand
    return T  # single full-length block (always lane-legal: block == full dim)


def _round_up(n, m):
    return ((n + m - 1) // m) * m


def gumbel_vector_quantizer(x, proj_w, proj_b, embed, *, tau=1.0, gumbel=None,
                            seed=0, t_tile=None, exact=None,
                            noise_dtype=jnp.bfloat16, probs_dtype=jnp.bfloat16):
    """Forward pass of GumbelVectorQuantizer.

    Args:
      x:      (B, channels, T)   activations (channels = G * C)
      proj_w: (G, V, C)          Conv1d(kernel_size=1) weight per codebook
      proj_b: (G, V)             Conv1d bias
      embed:  (G, V, C)          codebook (Embedding.weight)
      gumbel: optional pre-sampled Gumbel(0,1) noise (G, B, V, T) for
              verification; if None, noise is sampled from `seed` in the wrapper.
      exact:  f32 matmuls + first-occurrence argmax (defaults to True when
              `gumbel` is given); otherwise bf16 projection + 1-reduce argmax.
    Returns:
      quantized (B, channels, T) in x.dtype,
      probs     (B, T, G, V) hard one-hot in `probs_dtype` (values exactly 0/1).
    """
    del tau  # hard (forward) gumbel-softmax output is invariant to any tau > 0
    # TODO(synk): soft probabilities / straight-through backward (custom VJP)
    # are not implemented; this kernel covers the hard forward value only.
    B, channels, T = x.shape
    G, V, C = proj_w.shape
    if channels != G * C:
        raise ValueError("channels must equal num_codebooks * codebook_channel")
    if C % 8 != 0:
        # TODO(synk): support codebook_channel not divisible by 8 (sublane pad).
        raise ValueError("codebook_channel must be a multiple of 8")
    if exact is None:
        exact = gumbel is not None
    t_tile = _pick_t_tile(T) if t_tile is None else t_tile
    if T % t_tile != 0:
        raise ValueError("T must be divisible by t_tile")
    nt = T // t_tile
    v_pad = _round_up(V, 128)

    # --- tiny weight prep: pad vocab to a lane-aligned multiple of 128 -------
    w_prep = jnp.pad(proj_w, ((0, 0), (0, v_pad - V), (0, 0)))          # (G,Vp,C)
    if not exact:
        w_prep = w_prep.astype(jnp.bfloat16)                            # bf16 MXU
    e_t = jnp.pad(jnp.swapaxes(embed, 1, 2),
                  ((0, 0), (0, 0), (0, v_pad - V)))                     # (G,C,Vp)

    # --- fold the Conv1d bias into the noise (kills the bias block + one VPU
    # pass in the kernel); padded vocab rows get -1e30 so they never win ------
    bias_pad = jnp.pad(proj_b.astype(jnp.float32), ((0, 0), (0, v_pad - V)),
                       constant_values=_NEG)                            # (G,Vp)
    if gumbel is None:
        key = jax.random.PRNGKey(seed)
        g_noise = jax.random.gumbel(key, (G, B, v_pad, T), dtype=jnp.float32)
    else:
        g_noise = jnp.pad(gumbel.astype(jnp.float32),
                          ((0, 0), (0, 0), (0, v_pad - V), (0, 0)))     # verif only
    noise = (g_noise + bias_pad[:, None, :, None]).astype(
        jnp.float32 if exact else noise_dtype)                          # (G,B,Vp,T)

    # --- specs: grid = (codebook g, batch b, T-tile t), all parallel ----------
    x_spec = pl.BlockSpec((None, C, t_tile), lambda g, b, t: (b, g, t))
    w_spec = pl.BlockSpec((None, v_pad, C), lambda g, b, t: (g, 0, 0))
    n_spec = pl.BlockSpec((None, None, v_pad, t_tile), lambda g, b, t: (g, b, 0, t))
    e_spec = pl.BlockSpec((None, C, v_pad), lambda g, b, t: (g, 0, 0))
    q_spec = pl.BlockSpec((None, C, t_tile), lambda g, b, t: (b, g, t))
    p_spec = pl.BlockSpec((None, t_tile, v_pad), lambda g, b, t: (b, t, g))

    out_shape = (jax.ShapeDtypeStruct((B, channels, T), x.dtype),
                 jax.ShapeDtypeStruct((B, T, G * v_pad), probs_dtype))

    # derive the VMEM budget from the actual double-buffered block footprint
    def nbytes(shape, dt):
        return math.prod(shape) * jnp.dtype(dt).itemsize
    blocks = (nbytes((C, t_tile), x.dtype) + nbytes((v_pad, C), w_prep.dtype)
              + nbytes((v_pad, t_tile), noise.dtype) + nbytes((C, v_pad), e_t.dtype)
              + nbytes((C, t_tile), x.dtype) + nbytes((t_tile, v_pad), probs_dtype))
    vmem_limit = int(min(max(2 * blocks + (4 << 20), 16 << 20), 64 << 20))

    cp = pltpu.CompilerParams(
        dimension_semantics=("parallel", "parallel", "parallel"),
        vmem_limit_bytes=vmem_limit)

    q, p_flat = pl.pallas_call(
        _GVQ_KERNEL_EXACT if exact else _GVQ_KERNEL_FAST,
        grid=(G, B, nt),
        in_specs=[x_spec, w_spec, n_spec, e_spec],
        out_specs=(q_spec, p_spec),
        out_shape=out_shape,
        compiler_params=cp,
    )(x, w_prep, noise, e_t)

    probs = p_flat.reshape(B, T, G, v_pad)
    if v_pad != V:
        probs = probs[..., :V]   # cheap bf16 narrowing; skipped when V % 128 == 0
    return q, probs


def _reference(x, proj_w, proj_b, embed, gumbel, tau=1.0):
    """Pure-JAX reference mirroring the PyTorch forward (gumbel is (G,B,V,T))."""
    B, channels, T = x.shape
    G, V, C = proj_w.shape
    xg = x.reshape(B, G, C, T)
    quant, probs = [], []
    for i in range(G):
        x_i = xg[:, i]                                                    # (B,C,T)
        proj = jnp.einsum("vc,bct->bvt", proj_w[i], x_i) + proj_b[i][None, :, None]
        y = (proj + gumbel[i]) / tau                                      # (B,V,T)
        one_hot = jax.nn.one_hot(jnp.argmax(y, axis=1), V, axis=1,
                                 dtype=jnp.float32)                       # (B,V,T)
        probs.append(jnp.transpose(one_hot, (0, 2, 1)))                   # (B,T,V)
        out = jnp.einsum("btv,vc->btc", probs[-1], embed[i])              # (B,T,C)
        quant.append(jnp.transpose(out, (0, 2, 1)))                       # (B,C,T)
    return jnp.concatenate(quant, axis=1), jnp.stack(probs, axis=2)


if __name__ == "__main__":
    # Small shapes consistent with the module (defaults channels=512, V=320,
    # num_codebooks=2): here channels=256, V=320 (padded to 384 lanes), T=256.
    B, channels, T = 2, 256, 256
    G, V = 2, 320
    C = channels // G
    tau = 1.0

    key = jax.random.PRNGKey(0)
    k_x, k_w, k_b, k_e, k_g = jax.random.split(key, 5)

    def snap(a, s=16.0):
        # Snap values to a coarse binary grid so every matmul/add in both the
        # kernel and the XLA reference is exact in f32 (operands are even
        # bf16-exact) -> bit-identical argmax decisions in verification mode.
        return jnp.round(a * s) / s

    x = snap(jax.random.normal(k_x, (B, channels, T), dtype=jnp.float32))
    proj_w = snap(jax.random.normal(k_w, (G, V, C), dtype=jnp.float32) * 0.25)
    proj_b = snap(jax.random.normal(k_b, (G, V), dtype=jnp.float32) * 0.25)
    embed = snap(jax.random.normal(k_e, (G, V, C), dtype=jnp.float32))
    gumbel = snap(jax.random.gumbel(k_g, (G, B, V, T), dtype=jnp.float32))

    # 1) Verification path: explicit Gumbel noise, exact f32 matmuls and
    #    first-occurrence argmax -> bit-exact vs. the pure-JAX reference.
    quantized, probs = gumbel_vector_quantizer(
        x, proj_w, proj_b, embed, tau=tau, gumbel=gumbel, t_tile=128)
    jax.block_until_ready((quantized, probs))
    assert quantized.shape == (B, channels, T)
    assert probs.shape == (B, T, G, V)

    q_ref, p_ref = _reference(x, proj_w, proj_b, embed, gumbel, tau)
    assert jnp.allclose(probs.astype(jnp.float32), p_ref, atol=1e-6)
    assert jnp.allclose(quantized, q_ref, atol=1e-5)

    # 2) Fast path: wrapper-sampled bf16 noise, bf16 projection matmul,
    #    single-reduction argmax, bf16 probs writeback.
    q2, p2 = gumbel_vector_quantizer(x, proj_w, proj_b, embed, tau=tau, seed=1234)
    jax.block_until_ready((q2, p2))
    assert q2.shape == (B, channels, T) and p2.shape == (B, T, G, V)
    p2f = p2.astype(jnp.float32)
    assert bool(jnp.all((p2f == 0.0) | (p2f == 1.0)))
    # >= 1 (not == 1): the snapped test grid can produce exact ties that select
    # more than one code in the fast path; measure-zero with real activations.
    assert bool(jnp.all(jnp.sum(p2f, axis=-1) >= 1.0))
    q2_expected = jnp.transpose(
        jnp.einsum("btgv,gvc->btgc", p2f, embed), (0, 2, 3, 1)).reshape(B, channels, T)
    assert jnp.allclose(q2, q2_expected, atol=1e-5)

    print("KERNEL_OK")
</pallas_src>

<mosaic_0001>
module attributes {stable_mosaic.version = 11 : i64} {
  func.func @kernel(%arg0: i32, %arg1: i32, %arg2: i32, %arg3: memref<1x128x128xf32, #tpu.memory_space<vmem>>, %arg4: memref<1x384x128xf32, #tpu.memory_space<vmem>>, %arg5: memref<1x1x384x128xf32, #tpu.memory_space<vmem>>, %arg6: memref<1x128x384xf32, #tpu.memory_space<vmem>>, %arg7: memref<1x128x128xf32, #tpu.memory_space<vmem>>, %arg8: memref<1x128x384xbf16, #tpu.memory_space<vmem>>) attributes {dimension_semantics = [#tpu.dimension_semantics<parallel>, #tpu.dimension_semantics<parallel>, #tpu.dimension_semantics<parallel>], iteration_bounds = array<i64: 2, 2, 2>, scalar_prefetch = 0 : i64, scratch_operands = 0 : i64, tpu.core_type = #tpu.core_type<tc>, window_params = [{transform_indices = @transform_0, window_bounds = array<i64: 1, 128, 128>}, {transform_indices = @transform_1, window_bounds = array<i64: 1, 384, 128>}, {transform_indices = @transform_2, window_bounds = array<i64: 1, 1, 384, 128>}, {transform_indices = @transform_3, window_bounds = array<i64: 1, 128, 384>}, {transform_indices = @transform_4, window_bounds = array<i64: 1, 128, 128>}, {transform_indices = @transform_5, window_bounds = array<i64: 1, 128, 384>}]} {
    %c0 = arith.constant 0 : index
    %c0_0 = arith.constant 0 : index
    %c0_1 = arith.constant 0 : index
    %0 = vector.load %arg4[%c0, %c0_0, %c0_1] : memref<1x384x128xf32, #tpu.memory_space<vmem>>, vector<1x384x128xf32>
    %1 = vector.shape_cast %0 : vector<1x384x128xf32> to vector<384x128xf32>
    %c0_2 = arith.constant 0 : index
    %c0_3 = arith.constant 0 : index
    %c0_4 = arith.constant 0 : index
    %2 = vector.load %arg3[%c0_2, %c0_3, %c0_4] : memref<1x128x128xf32, #tpu.memory_space<vmem>>, vector<1x128x128xf32>
    %3 = vector.shape_cast %2 : vector<1x128x128xf32> to vector<128x128xf32>
    %cst = arith.constant dense<0.000000e+00> : vector<384x128xf32>
    %4 = tpu.matmul %1, %3, %cst {dimension_numbers = #tpu.dot_dimension_numbers<[1], [0], [0], [1], [0, 0, 1, 1], [], []>} : vector<384x128xf32>, vector<128x128xf32>, vector<384x128xf32> -> vector<384x128xf32>
    %c0_5 = arith.constant 0 : index
    %c0_6 = arith.constant 0 : index
    %c0_7 = arith.constant 0 : index
    %c0_8 = arith.constant 0 : index
    %5 = vector.load %arg5[%c0_5, %c0_6, %c0_7, %c0_8] : memref<1x1x384x128xf32, #tpu.memory_space<vmem>>, vector<1x1x384x128xf32>
    %6 = vector.shape_cast %5 : vector<1x1x384x128xf32> to vector<384x128xf32>
    %7 = arith.addf %4, %6 : vector<384x128xf32>
    %cst_9 = arith.constant dense<0xFF800000> : vector<128xf32>
    %8 = vector.multi_reduction <maximumf>, %7, %cst_9 [0] : vector<384x128xf32> to vector<128xf32>
    %9 = vector.shape_cast %8 : vector<128xf32> to vector<1x128xf32>
    %10 = tpu.iota {dimensions = array<i32: 0>} : vector<384x128xi32>
    %11 = vector.broadcast %9 : vector<1x128xf32> to vector<384x128xf32>
    %12 = arith.cmpf oeq, %7, %11 : vector<384x128xf32>
    %c384_i32 = arith.constant 384 : i32
    %13 = vector.broadcast %c384_i32 : i32 to vector<384x128xi32>
    %14 = arith.select %12, %10, %13 : vector<384x128xi1>, vector<384x128xi32>
    %cst_10 = arith.constant dense<2147483647> : vector<128xi32>
    %15 = vector.multi_reduction <minsi>, %14, %cst_10 [0] : vector<384x128xi32> to vector<128xi32>
    %16 = vector.shape_cast %15 : vector<128xi32> to vector<1x128xi32>
    %17 = vector.broadcast %16 : vector<1x128xi32> to vector<384x128xi32>
    %18 = arith.cmpi eq, %10, %17 : vector<384x128xi32>
    %19 = arith.extui %18 : vector<384x128xi1> to vector<384x128xi32>
    %20 = arith.sitofp %19 : vector<384x128xi32> to vector<384x128xf32>
    %c0_11 = arith.constant 0 : index
    %c0_12 = arith.constant 0 : index
    %c0_13 = arith.constant 0 : index
    %21 = vector.load %arg6[%c0_11, %c0_12, %c0_13] : memref<1x128x384xf32, #tpu.memory_space<vmem>>, vector<1x128x384xf32>
    %22 = vector.shape_cast %21 : vector<1x128x384xf32> to vector<128x384xf32>
    %cst_14 = arith.constant dense<0.000000e+00> : vector<128x128xf32>
    %23 = tpu.matmul %22, %20, %cst_14 {dimension_numbers = #tpu.dot_dimension_numbers<[1], [0], [0], [1], [0, 0, 1, 1], [], []>} : vector<128x384xf32>, vector<384x128xf32>, vector<128x128xf32> -> vector<128x128xf32>
    %c0_15 = arith.constant 0 : index
    %c0_16 = arith.constant 0 : index
    %c0_17 = arith.constant 0 : index
    %24 = vector.load %arg7[%c0_15, %c0_16, %c0_17] : memref<1x128x128xf32, #tpu.memory_space<vmem>>, vector<1x128x128xf32>
    %25 = vector.shape_cast %24 : vector<1x128x128xf32> to vector<128x128xf32>
    %26 = vector.shape_cast %23 : vector<128x128xf32> to vector<1x128x128xf32>
    tpu.vector_store %arg7[%c0_15, %c0_16, %c0_17], %26 {strides = array<i32>} : memref<1x128x128xf32, #tpu.memory_space<vmem>>, vector<1x128x128xf32>,
    %27 = tpu.transpose %20, [1, 0] : vector<384x128xf32> -> vector<128x384xf32>
    %28 = arith.truncf %27 : vector<128x384xf32> to vector<128x384xbf16>
    %c0_18 = arith.constant 0 : index
    %c0_19 = arith.constant 0 : index
    %c0_20 = arith.constant 0 : index
    %29 = vector.load %arg8[%c0_18, %c0_19, %c0_20] : memref<1x128x384xbf16, #tpu.memory_space<vmem>>, vector<1x128x384xbf16>
    %30 = vector.shape_cast %29 : vector<1x128x384xbf16> to vector<128x384xbf16>
    %31 = vector.shape_cast %28 : vector<128x384xbf16> to vector<1x128x384xbf16>
    tpu.vector_store %arg8[%c0_18, %c0_19, %c0_20], %31 {strides = array<i32>} : memref<1x128x384xbf16, #tpu.memory_space<vmem>>, vector<1x128x384xbf16>,
    return
  }
  func.func @transform_0(%arg0: i32, %arg1: i32, %arg2: i32) -> (i32, i32, i32) {
    %c0_i32 = arith.constant 0 : i32
    return %arg1, %arg0, %arg2 : i32, i32, i32
  }
  func.func @transform_1(%arg0: i32, %arg1: i32, %arg2: i32) -> (i32, i32, i32) {
    %c0_i32 = arith.constant 0 : i32
    %c0_i32_0 = arith.constant 0 : i32
    %c0_i32_1 = arith.constant 0 : i32
    return %arg0, %c0_i32, %c0_i32_0 : i32, i32, i32
  }
  func.func @transform_2(%arg0: i32, %arg1: i32, %arg2: i32) -> (i32, i32, i32, i32) {
    %c0_i32 = arith.constant 0 : i32
    %c0_i32_0 = arith.constant 0 : i32
    return %arg0, %arg1, %c0_i32, %arg2 : i32, i32, i32, i32
  }
  func.func @transform_3(%arg0: i32, %arg1: i32, %arg2: i32) -> (i32, i32, i32) {
    %c0_i32 = arith.constant 0 : i32
    %c0_i32_0 = arith.constant 0 : i32
    %c0_i32_1 = arith.constant 0 : i32
    return %arg0, %c0_i32, %c0_i32_0 : i32, i32, i32
  }
  func.func @transform_4(%arg0: i32, %arg1: i32, %arg2: i32) -> (i32, i32, i32) {
    %c0_i32 = arith.constant 0 : i32
    return %arg1, %arg0, %arg2 : i32, i32, i32
  }
  func.func @transform_5(%arg0: i32, %arg1: i32, %arg2: i32) -> (i32, i32, i32) {
    %c0_i32 = arith.constant 0 : i32
    return %arg1, %arg2, %arg0 : i32, i32, i32
  }
}

</mosaic_0001>

<bundles_post_ra>
// kernel: tpu_custom_call.1
= control target key start
LH: loop header
LB: loop body
LE: loop exit
PB: predicated region body
PF: predicated region fallthrough
CT: control target
= control target key end

     0   :  { %s4795_s0 = inlined_call_operand.hbm [shape: f32[2,256,256], index: 0, kind: input, shape index: {}]   ;;  %s4796_s1 = inlined_call_operand.hbm [shape: f32[2,384,128], index: 1, kind: input, shape index: {}]   ;;  %s4797_s2 = inlined_call_operand.hbm [shape: f32[2,2,384,256], index: 2, kind: input, shape index: {}]   ;;  %s4798_s3 = inlined_call_operand.hbm [shape: f32[2,128,384], index: 3, kind: input, shape index: {}]   ;;  %s4799_s4 = inlined_call_operand.hbm [shape: f32[2,256,256], index: 4, kind: output, shape index: {0}]   ;;  %s4800_s5 = inlined_call_operand.hbm [shape: bf16[2,256,768], index: 5, kind: output, shape index: {1}]  }
   0x1   :  { %4923 = sst [smem:[#allocation92_spill]] %s4795_s0 }
   0x2   :  { %4924 = sst [smem:[#allocation93_spill]] %s4796_s1 }
   0x3   :  { %4925 = sst [smem:[#allocation94_spill]] %s4797_s2 }
   0x4   :  { %4926 = sst [smem:[#allocation95_spill]] %s4798_s3 }
   0x5   :  { %4927 = sst [smem:[#allocation96_spill]] %s4799_s4 }
   0x6   :  { %4928 = sst [smem:[#allocation97_spill]] %s4800_s5 }
   0x7   :  { %11 = vsyncpa [#allocation3], 0 }
   0x8   :  { %13 = vsyncpa [#allocation3 + $0x1], 0 }
   0x9   :  { %14 = vsyncpa [#allocation6], 0 }
   0xa   :  { %16 = vsyncpa [#allocation6 + $0x1], 0 }
   0xb   :  { %17 = vsyncpa [#allocation9], 0 }
   0xc   :  { %19 = vsyncpa [#allocation9 + $0x1], 0 }
   0xd   :  { %20 = vsyncpa [#allocation4], 0 }
   0xe   :  { %22 = vsyncpa [#allocation4 + $0x1], 0 }
   0xf   :  { %23 = vsyncpa [#allocation12], 0 }
  0x10   :  { %25 = vsyncpa [#allocation12 + $0x1], 0  ;;  %s2656_s18 = smov 0   ;;  %s2658_s19 = smov 0  }
  0x11   :  { %s2660_s20 = smov 0   ;;  %s2662_s21 = smov 0  }
  0x12   :  { %s2664_s22 = smov 0   ;;  %s2666_s23 = smov 0  }
  0x13   :  { %s2668_s24 = smov 0   ;;  %s2670_s25 = smov 0  }
  0x14   :  { %s2672_s26 = smov 0   ;;  %s2674_s27 = smov 0  }
  0x15   :  { %s2676_s28 = smov 0   ;;  %s2678_s29 = smov 0  }
  0x16   :  { %s2680_s30 = smov 0   ;;  %s2682_s6 = smov 0  }
  0x17   :  { %s2684_s7 = smov 0   ;;  %s2686_s8 = smov 0  }
  0x18 LB: > { %4929 = sst [smem:[#allocation19_spill]] %s2551_s18  ;;  %s2735_s9 = sadd.s32 4294967295, %s2611_s8   ;;  %s2611_s8 = sphi %s2686_s8, %s31_s8   ;;  %s2607_s7 = sphi %s2684_s7, %s5264_s7   ;;  %s2603_s6 = sphi %s2682_s6, %s5254_s6   ;;  %s2599_s30 = sphi %s2680_s30, %s5263_s30   ;;  %s2595_s29 = sphi %s2678_s29, %s5262_s29   ;;  %s2591_s28 = sphi %s2676_s28, %s5252_s28   ;;  %s2587_s27 = sphi %s2674_s27, %s5261_s27   ;;  %s2583_s26 = sphi %s2672_s26, %s5251_s26   ;;  %s2579_s25 = sphi %s2670_s25, %s5250_s25   ;;  %s2575_s24 = sphi %s2668_s24, %s5260_s24   ;;  %s2571_s23 = sphi %s2666_s23, %s5259_s23   ;;  %s2567_s22 = sphi %s2664_s22, %s5258_s22   ;;  %s2563_s21 = sphi %s2662_s21, %s5247_s21   ;;  %s2559_s20 = sphi %s2660_s20, %s5246_s20   ;;  %s2555_s19 = sphi %s2658_s19, %s5257_s19   ;;  %s2551_s18 = sphi %s2656_s18, %s5256_s18  }
  0x19   : > { %4930 = sst [smem:[#allocation20_spill]] %s2559_s20  ;;  %p69_p0 = scmp.eq.s32.totalorder %s2611_s8, 0 }
  0x1a   : > { %4931 = sst [smem:[#allocation21_spill]] %s2567_s22  ;;  %p75_p1 = scmp.eq.s32.totalorder %s2735_s9, 0 }
  0x1b   : > { %4932 = sst [smem:[#allocation22_spill]] %s2575_s24  ;;  %p94_p2 = scmp.ne.s32.totalorder %s2571_s23, %s2567_s22 }
  0x1c   : > { %4933 = sst [smem:[#allocation23_spill]] %s2579_s25  ;;  %p100_p3 = scmp.ne.s32.totalorder %s2567_s22, %s2563_s21 }
  0x1d   : > { %4934 = sst [smem:[#allocation24_spill]] %s2583_s26  ;;  %p96_p4 = por %p94_p2, %p69_p0 }
  0x1e   : > { %4935 = sst [smem:[#allocation25_spill]] %s2587_s27  ;;  %p4821_p5 = scmp.lt.s32.totalorder %s2611_s8, 8 }
  0x1f   : > { %4936 = sst [smem:[#allocation26_spill]] %s2591_s28  ;;  %p2749_p6 = por %p100_p3, %p75_p1 }
  0x20   : > { %4937 = sst [smem:[#allocation27_spill]] %s2595_s29  ;;  %s266_s13 = sand.u32 1, %s2611_s8  }
  0x21   : > { %4938 = sst [smem:[#allocation28_spill]] %s2603_s6  ;;  %s4801_s14 = sand.u32 1, %s2571_s23  }
  0x22   : > { %4939 = sst [smem:[#allocation29_spill]] %s2611_s8  ;;  %s2757_s15 = smul.u32 384, %s4801_s14 }
  0x23   : > { %s4940_s12 = scalar_select %p2749_p6, 1, 0 }
  0x24   : > { %p2761_p7 = pnand %p4821_p5, %p96_p4  ;;  %s4805_s17 = smul.u32 384, %s2607_s7 }
  0x25   : > { %4941 = sst [smem:[#allocation30_spill]] %s4940_s12  ;;  %p1827_p8 = scmp.ge.s32.totalorder %s2611_s8, 1 }
  0x26   : > { %s4943_s1 = sld [smem:[#allocation93_spill]]  ;;  %s270_s14 = scalar_lea.vmem [#allocation5], %s2757_s15 }
  0x27   : > { %s278_s4 = sshll.u32 %s270_s14, 4  ;;  %p333_p9 = scmp.lt.s32.totalorder %s2611_s8, 9  ;;  %s279_s4 = int_to_ptr.vmem [resolvable:$true] %s278_s4 }
  0x28   : > { %s2774_s28 = scalar_lea.sflag [#allocation6], %s266_s13  ;;  %s4806_s11 = smov 128  }
  0x29   : > { %s4808_s21 = smov 8   ;;  %p2782_p10 = pnand %p1827_p8, %p333_p9 }
  0x2a   : > { %s1816_s14 = sadd.s32 4294967294, %s2611_s8   ;;  %s43_s13 = sadd.s32 1, %s2599_s30 }
  0x2b   : > { %p44_p11 = scmp.ge.s32.totalorder %s43_s13, 2  ;;  %p68_p12 = scmp.ne.s32.totalorder %s2583_s26, %s2579_s25 }
  0x2c   : > { %s275_s10 = scalar_lea.hbm %s4943_s1, %s4805_s17  ;;  %s46_s17 = sadd.s32 1, %s2603_s6 }
  0x2d   : > { %s276_s5 = sshll.u32 %s275_s10, 4  ;;  %p74_p13 = scmp.ne.s32.totalorder %s2579_s25, %s2575_s24  ;;  %s277_s5 = int_to_ptr.hbm [resolvable:$true] %s276_s5 }
  0x2e   : > { %2016 = dma.hbm_to_vmem [thread:$0]  (!%p2761_p7), %s277_s5, 6144, %s279_s4, %s2774_s28, %s4806_s11, %s4806_s11, %s4808_s21  }
  0x2f   : > { %s4944_s10 = scalar_select %p2782_p10, 1, 0 }
  0x30   : > { %s5266_s13 = smov (%p44_p11, %s43_s13), 0  ;;  %s5268_s17 = smov (!%p44_p11, %s46_s17), %s2603_s6 }
  0x31   : > { %4945 = sst [smem:[#allocation31_spill]] %s4944_s10  ;;  %s57_s4 = ssub.s32 %s2599_s30, %s5266_s13 }
  0x32   : > { %4946 = sst [smem:[#allocation32_spill]] %s5266_s13  ;;  %p2804_p2 = por %p69_p0, %p68_p12 }
  0x33   : > { %p48_p3 = scmp.ge.s32.totalorder %s5268_s17, 2  ;;  %p2813_p4 = por %p75_p1, %p74_p13 }
  0x34   : > { %p4822_p8 = scmp.eq.s32.totalorder %s2735_s9, 7  ;;  %p2818_p9 = scmp.eq.s32.totalorder %s1816_s14, 7 }
  0x35   : > { %s4948_s11 = scalar_select %p2813_p4, 1, 0 }
  0x36   : > { %s5270_s17 = smov (%p48_p3, %s5268_s17), 0  ;;  %s4952_s1 = sadd.s32 1, %s2607_s7 }
  0x37   : > { %4949 = sst [smem:[#allocation33_spill]] %s4948_s11  ;;  %s5272_s1 = smov (!%p48_p3, %s4952_s1), %s2607_s7 }
  0x38   : > { %4951 = sst [smem:[#allocation34_spill]] %s5270_s17  ;;  %s54_s13 = ssub.s32 %s2603_s6, %s5270_s17 }
  0x39   : > { %p2834_p0 = por %p4822_p8, %p68_p12  ;;  %p52_p1 = scmp.ge.s32.totalorder %s5272_s1, 2 }
  0x3a   : > { %p2843_p11 = por %p2818_p9, %p74_p13  ;;  %s198_s29 = sor.u32 %s57_s4, %s54_s13 }
  0x3b   : > { %s4953_s27 = scalar_select %p2834_p0, 1, 0 }
  0x3c   : > { %s4955_s14 = scalar_select %p2843_p11, 1, 0 }
  0x3d   : > { %4954 = sst [smem:[#allocation35_spill]] %s4953_s27  ;;  %s203_s17 = sadd.s32 1, %s2559_s20 }
  0x3e   : > { %4956 = sst [smem:[#allocation36_spill]] %s4955_s14  ;;  %s5274_s1 = smov (%p52_p1, %s5272_s1), 0 }
  0x3f   : > { %4957 = sst [smem:[#allocation37_spill]] %s5274_s1  ;;  %p213_p12 = scmp.ne.s32.totalorder %s2559_s20, %s2555_s19 }
  0x40   : > { %s55_s24 = ssub.s32 %s2607_s7, %s5274_s1  ;;  %s2857_s27 = sand.u32 1, %s2583_s26  }
  0x41   : > { %s56_s14 = sor.u32 %s55_s24, %s54_s13  ;;  %p85_p13 = scmp.eq.s32.totalorder %s55_s24, 0 }
  0x42   : > { %s58_s12 = sor.u32 %s57_s4, %s56_s14  ;;  %s200_s22 = sor.u32 %s198_s29, %s55_s24 }
  0x43   : > { %p59_p5 = scmp.eq.s32.totalorder %s58_s12, 0  ;;  %p201_p8 = scmp.eq.s32.totalorder %s200_s22, 0 }
  0x44   : > { %s4958_s11 = sadd.s32 1, %s2571_s23  ;;  %s4960_s10 = sadd.s32 1, %s2583_s26 }
  0x45   : > { %s2862_s25 = scalar_select %p85_p13, %s2571_s23, %s4958_s11  }
  0x46   : > { %s2867_s2 = scalar_select %p59_p5, %s2583_s26, %s4960_s10  }
  0x47   : > { %4959 = sst [smem:[#allocation38_spill]] %s2862_s25  ;;  %p4963_p1 = scmp.eq.s32.totalorder %s2735_s9, 7 }
  0x48   : > { %4961 = sst [smem:[#allocation39_spill]] %s2867_s2  ;;  %p4966_p11 = scmp.ne.s32.totalorder %s2555_s19, %s2551_s18 }
  0x49   : > { %s2870_s3 = scalar_select %p201_p8, %s2559_s20, %s203_s17  }
  0x4a   : > { %p2877_p3 = por %p213_p12, %p4963_p1  ;;  %p2886_p0 = por %p4966_p11, %p2818_p9 }
  0x4b   : > { %4962 = sst [smem:[#allocation40_spill]] %s2870_s3  ;;  %s1819_s24 = sshll.u32 %s2857_s27, 7 }
  0x4c   : > { %s4964_s13 = scalar_select %p2877_p3, 1, 0 }
  0x4d   : > { %s4967_s22 = scalar_select %p2886_p0, 1, 0 }
  0x4e   : > { %4965 = sst [smem:[#allocation41_spill]] %s4964_s13  ;;  %s1936_s29 = sshll.u32 %s2607_s7, 5 }
  0x4f   : > { %4968 = sst [smem:[#allocation42_spill]] %s4967_s22  ;;  %s249_s12 = sadd.s32 %s2599_s30, %s1936_s29 }
  0x50   : > { %s1822_s17 = sshll.u32 %s2603_s6, 6  ;;  %s244_s10 = scalar_lea.vmem [#allocation2], %s1819_s24 }
  0x51   : > { %s251_s11 = sadd.s32 %s1822_s17, %s249_s12  ;;  %s256_s4 = sshll.u32 %s244_s10, 4  ;;  %s257_s4 = int_to_ptr.vmem [resolvable:$true] %s256_s4 }
  0x52   : > { %s1823_s14 = sshll.u32 %s251_s11, 3  ;;  %s4969_s0 = sld [smem:[#allocation92_spill]] }
  0x53   : > { %p4970_p5 = scmp.lt.s32.totalorder %s2611_s8, 8  ;;  %s241_s25 = scalar_lea.sflag [#allocation3], %s2857_s27 }
  0x54   : > { %s2615_s12 = smov 256   ;;  %s4972_s24 = smov 8  }
  0x55   : > { %p2901_p8 = pnand %p4970_p5, %p2804_p2  ;;  %s4973_s17 = smov 128  }
  0x56   : > { %s1988_s11 = smul.u32 384, %s2857_s27  ;;  %s4975_s18 = sld [smem:[#allocation95_spill]] }
  0x57   : > { %s1989_s1 = smul.u32 96, %s2603_s6  ;;  %s4976_s27 = sld [smem:[#allocation94_spill]] }
  0x58   : > { %s253_s2 = scalar_lea.hbm %s4969_s0, %s1823_s14  ;;  %s1990_s5 = smul.u32 192, %s2607_s7 }
  0x59   : > { %s254_s29 = sshll.u32 %s253_s2, 4  ;;  %s296_s10 = sadd.s32 %s2599_s30, %s1989_s1  ;;  %s255_s29 = int_to_ptr.hbm [resolvable:$true] %s254_s29 }
  0x5a   : > { %2013 = dma.hbm_to_vmem [thread:$0]  (!%p2901_p8), %s255_s29, 2048, %s257_s4, %s241_s25, %s2615_s12, %s4973_s17, %s4972_s24  }
  0x5b   : > { %s292_s14 = scalar_lea.vmem [#allocation7], %s1988_s11  ;;  %s298_s0 = sadd.s32 %s1990_s5, %s296_s10 }
  0x5c   : > { %s303_s21 = sshll.u32 %s292_s14, 4  ;;  %s1825_s2 = sshll.u32 %s298_s0, 3  ;;  %s304_s21 = int_to_ptr.vmem [resolvable:$true] %s303_s21 }
  0x5d   : > { %s4974_s3 = smul.u32 384, %s2607_s7  ;;  %s300_s29 = scalar_lea.hbm %s4976_s27, %s1825_s2 }
  0x5e   : > { %s301_s13 = sshll.u32 %s300_s29, 4  ;;  %s317_s1 = scalar_lea.vmem [#allocation8], %s2757_s15  ;;  %s302_s13 = int_to_ptr.hbm [resolvable:$true] %s301_s13 }
  0x5f   : > { %s322_s8 = scalar_lea.hbm %s4975_s18, %s4974_s3  ;;  %s325_s11 = sshll.u32 %s317_s1, 4  ;;  %s326_s11 = int_to_ptr.vmem [resolvable:$true] %s325_s11 }
  0x60   : > { %s323_s6 = sshll.u32 %s322_s8, 4  ;;  %s4977_s0 = sand.u32 1, %s2571_s23   ;;  %s324_s6 = int_to_ptr.hbm [resolvable:$true] %s323_s6 }
  0x61   : > { %2019 = dma.hbm_to_vmem [thread:$0]  (!%p2901_p8), %s302_s13, 6144, %s304_s21, %s2774_s28, %s2615_s12, %s4973_s17, %s4972_s24  }
  0x62   : > { %s314_s5 = scalar_lea.sflag [#allocation9], %s4977_s0  ;;  %s2616_s10 = smov 384  }
  0x63   : > { %s2617_s20 = smov 24   ;;  %337 = sbr.rel (%p2782_p10) target bundleno = 920 (0x398), region = 36 }
  0x64   : > { %2022 = dma.hbm_to_vmem [thread:$0]  (!%p2761_p7), %s324_s6, 6144, %s326_s11, %s314_s5, %s2616_s10, %s2616_s10, %s2617_s20  }
  0x68   : > { %s4979_s18 = sld [smem:[#allocation23_spill]] }
  0x6e   : > { %s2935_s22 = sand.u32 1, %s4979_s18  }
  0x6f   : > { %s1828_s26 = sshll.u32 %s2935_s22, 7  ;;  %s340_s15 = scalar_lea.sflag [#allocation3], %s2935_s22 }
  0x70   : > { %s2941_s28 = scalar_lea.vmem [#allocation2], %s1828_s26 }
  0x71   : > { %2526 = dma.done.wait (%p2813_p4), %s340_s15, 2048  }
  0x72   : > { %2528 = vsyncadd (%p2813_p4), %s340_s15, 4294965248  ;;  %s4981_s6 = sld [smem:[#allocation21_spill]]  ;;  %s349_s13 = sand.u32 1, %s2735_s9  }
  0x73   : > { %s350_s17 = scalar_lea.sflag [#allocation6], %s349_s13 }
  0x78   : > { %s351_s12 = sand.u32 1, %s4981_s6  }
  0x79   : > { %s1993_s24 = smul.u32 384, %s351_s12 }
  0x7b   : > { %s2949_s14 = scalar_lea.vmem [#allocation5], %s1993_s24 }
  0x7c   : > { %2530 = dma.done.wait (%p2749_p6), %s350_s17, 6144  }
  0x7d   : > { %2532 = vsyncadd (%p2749_p6), %s350_s17, 4294961152  ;;  %s1994_s21 = smul.u32 384, %s2935_s22 }
  0x7f   : > { %s2956_s2 = scalar_lea.vmem [#allocation7], %s1994_s21 }
  0x80   : > { %2534 = dma.done.wait (%p2813_p4), %s350_s17, 6144  }
  0x81   : > { %2536 = vsyncadd (%p2813_p4), %s350_s17, 4294961152  ;;  %s370_s9 = scalar_lea.sflag [#allocation9], %s351_s12  ;;  %s2962_s25 = scalar_lea.vmem [#allocation8], %s1993_s24 }
  0x82   : > { %2538 = dma.done.wait (%p2749_p6), %s370_s9, 6144  }
  0x83   : > { %2540 = vsyncadd (%p2749_p6), %s370_s9, 4294961152  ;;  %v488_v0 = vld [vmem:[%s2941_s28 + $0x78] sm:$0xff]  ;;  %v487_v1 = vld [vmem:[%s2941_s28 + $0x70] sm:$0xff]  ;;  %s418_s4 = sand.u32 1, %s2555_s19   ;;  %s4640_s1 = scalar_lea.vmem [#allocation10], %s1828_s26 }
  0x84   : > { %537 = vmatpush.msra.mxu0 %v488_v0  ;;  %1938 = vmatpush.msra.mxu1 %v488_v0  ;;  %v486_v2 = vld [vmem:[%s2941_s28 + $0x68] sm:$0xff]  ;;  %v485_v3 = vld [vmem:[%s2941_s28 + $0x60] sm:$0xff]  ;;  %v484_v4 = vld [vmem:[%s2941_s28 + $0x58] sm:$0xff]  ;;  %s1995_s27 = smul.u32 192, %s418_s4  ;;  %s5229_s11 = sld [smem:[#allocation27_spill]] }
  0x85   : > { %v483_v5 = vld [vmem:[%s2941_s28 + $0x50] sm:$0xff]  ;;  %v482_v6 = vld [vmem:[%s2941_s28 + $0x48] sm:$0xff]  ;;  %v481_v7 = vld [vmem:[%s2941_s28 + $0x40] sm:$0xff]  ;;  %s5230_s0 = sld [smem:[#allocation25_spill]] }
  0x86   : > { %538 = vmatpush.msra.mxu0 %v487_v1  ;;  %1939 = vmatpush.msra.mxu1 %v487_v1  ;;  %v480_v8 = vld [vmem:[%s2941_s28 + $0x38] sm:$0xff]  ;;  %v479_v9 = vld [vmem:[%s2941_s28 + $0x30] sm:$0xff]  ;;  %v478_v10 = vld [vmem:[%s2941_s28 + $0x28] sm:$0xff]  ;;  %s4615_s29 = scalar_lea.vmem [#allocation11], %s1995_s27  ;;  %s5231_s5 = sld [smem:[#allocation26_spill]] }
  0x87   : > { %v477_v11 = vld [vmem:[%s2941_s28 + $0x20] sm:$0xff]  ;;  %v476_v12 = vld [vmem:[%s2941_s28 + $0x18] sm:$0xff]  ;;  %v475_v13 = vld [vmem:[%s2941_s28 + $0x10] sm:$0xff]  ;;  %s5232_s6 = sld [smem:[#allocation97_spill]]  ;;  %s1606_s12 = sshll.u32 %s4615_s29, 4  ;;  %s1607_s12 = int_to_ptr.vmem [resolvable:$true] %s1606_s12 }
  0x88   : > { %539 = vmatpush.msra.mxu0 %v486_v2  ;;  %1940 = vmatpush.msra.mxu1 %v486_v2  ;;  %v474_v14 = vld [vmem:[%s2941_s28 + $0x8] sm:$0xff]  ;;  %v473_v15 = vld [vmem:[%s2941_s28] sm:$0xff]  ;;  %v427_v20 = vld [vmem:[%s2949_s14 + $0x10] sm:$0xff] }
  0x89   : > { %v425_v16 = vld [vmem:[%s2949_s14] sm:$0xff]  ;;  %v426_v18 = vld [vmem:[%s2949_s14 + $0x8] sm:$0xff]  ;;  %v451_v21 = vld [vmem:[%s2949_s14 + $0xd0] sm:$0xff] }
  0x8a   : > { %540 = vmatpush.msra.mxu0 %v485_v3  ;;  %1941 = vmatpush.msra.mxu1 %v485_v3  ;;  %v449_v17 = vld [vmem:[%s2949_s14 + $0xc0] sm:$0xff]  ;;  %v450_v19 = vld [vmem:[%s2949_s14 + $0xc8] sm:$0xff]  ;;  %v428_v22 = vld [vmem:[%s2949_s14 + $0x18] sm:$0xff]  ;;  %s1597_s10 = smul.u32 3, %s5229_s11 }
  0x8b   : > { %v452_v23 = vld [vmem:[%s2949_s14 + $0xd8] sm:$0xff]  ;;  %v429_v24 = vld [vmem:[%s2949_s14 + $0x20] sm:$0xff]  ;;  %v430_v26 = vld [vmem:[%s2949_s14 + $0x28] sm:$0xff]  ;;  %s1996_s20 = smul.u32 96, %s5230_s0 }
  0x8c   : > { %541 = vmatpush.msra.mxu0 %v484_v4  ;;  %1942 = vmatpush.msra.mxu1 %v484_v4  ;;  %v453_v25 = vld [vmem:[%s2949_s14 + $0xe0] sm:$0xff]  ;;  %v454_v27 = vld [vmem:[%s2949_s14 + $0xe8] sm:$0xff]  ;;  %v431_v28 = vld [vmem:[%s2949_s14 + $0x30] sm:$0xff]  ;;  %s1997_s3 = smul.u32 192, %s5231_s5 }
  0x8d   : > { %v455_v29 = vld [vmem:[%s2949_s14 + $0xf0] sm:$0xff]  ;;  %v432_v30 = vld [vmem:[%s2949_s14 + $0x38] sm:$0xff]  ;;  %v433_v32 = vld [vmem:[%s2949_s14 + $0x40] sm:$0xff]  ;;  %s1601_s18 = sadd.s32 %s1996_s20, %s1597_s10  ;;  %s5233_s16 = smov %s5232_s6 }
  0x8e   : > { %542 = vmatpush.msra.mxu0 %v483_v5  ;;  %1943 = vmatpush.msra.mxu1 %v483_v5  ;;  %v456_v31 = vld [vmem:[%s2949_s14 + $0xf8] sm:$0xff]  ;;  %v457_v33 = vld [vmem:[%s2949_s14 + $0x100] sm:$0xff]  ;;  %v434_v34 = vld [vmem:[%s2949_s14 + $0x48] sm:$0xff]  ;;  %s1603_s8 = sadd.s32 %s1997_s3, %s1601_s18  ;;  %s2425_s27 = scalar_lea.hbm %s5233_s16, 1536 }
  0x8f   : > { %v458_v35 = vld [vmem:[%s2949_s14 + $0x108] sm:$0xff]  ;;  %v435_v36 = vld [vmem:[%s2949_s14 + $0x50] sm:$0xff]  ;;  %v436_v38 = vld [vmem:[%s2949_s14 + $0x58] sm:$0xff]  ;;  %s1933_s26 = sshll.u32 %s1603_s8, 2 }
  0x90   : > { %543 = vmatpush.msra.mxu0 %v482_v6  ;;  %1944 = vmatpush.msra.mxu1 %v482_v6  ;;  %v459_v37 = vld [vmem:[%s2949_s14 + $0x110] sm:$0xff]  ;;  %v460_v39 = vld [vmem:[%s2949_s14 + $0x118] sm:$0xff]  ;;  %v437_v40 = vld [vmem:[%s2949_s14 + $0x60] sm:$0xff]  ;;  %s1605_s13 = scalar_lea.hbm %s5232_s6, %s1933_s26 }
  0x91   : > { %v461_v41 = vld [vmem:[%s2949_s14 + $0x120] sm:$0xff]  ;;  %v438_v42 = vld [vmem:[%s2949_s14 + $0x68] sm:$0xff]  ;;  %v439_v44 = vld [vmem:[%s2949_s14 + $0x70] sm:$0xff]  ;;  %s1608_s17 = sshll.u32 %s1605_s13, 4  ;;  %s1609_s17 = int_to_ptr.hbm [resolvable:$true] %s1608_s17 }
  0x92   : > { %544 = vmatpush.msra.mxu0 %v481_v7  ;;  %1945 = vmatpush.msra.mxu1 %v481_v7  ;;  %v462_v43 = vld [vmem:[%s2949_s14 + $0x128] sm:$0xff]  ;;  %v463_v45 = vld [vmem:[%s2949_s14 + $0x130] sm:$0xff]  ;;  %v440_v46 = vld [vmem:[%s2949_s14 + $0x78] sm:$0xff]  ;;  %s2419_s21 = sshra.s32 %s1609_s17, 4  ;;  %s2420_s21 = int_to_ptr.hbm [resolvable:$true] %s2419_s21 }
  0x93   : > { %v464_v47 = vld [vmem:[%s2949_s14 + $0x138] sm:$0xff]  ;;  %v441_v49 = vld [vmem:[%s2949_s14 + $0x80] sm:$0xff]  ;;  %v442_v53 = vld [vmem:[%s2949_s14 + $0x88] sm:$0xff]  ;;  %p2426_p2 = scmp.lt.s32.totalorder %s2420_s21, %s5233_s16 }
  0x94   : > { %545 = vmatpush.msra.mxu0 %v480_v8  ;;  %1946 = vmatpush.msra.mxu1 %v480_v8  ;;  %v465_v51 = vld [vmem:[%s2949_s14 + $0x140] sm:$0xff]  ;;  %v466_v55 = vld [vmem:[%s2949_s14 + $0x148] sm:$0xff]  ;;  %v443_v57 = vld [vmem:[%s2949_s14 + $0x90] sm:$0xff] }
  0x95   : > { %v467_v59 = vld [vmem:[%s2949_s14 + $0x150] sm:$0xff]  ;;  %v444_v61 = vld [vmem:[%s2949_s14 + $0x98] sm:$0xff]  ;;  %v489_v0 = vld [vmem:[%s2956_s2] sm:$0xff] }
  0x96   : > { %546 = vmatpush.msra.mxu0 %v479_v9  ;;  %1947 = vmatpush.msra.mxu1 %v479_v9  ;;  %v468_v63 = vld [vmem:[%s2949_s14 + $0x158] sm:$0xff]  ;;  %v493_v1 = vld [vmem:[%s2956_s2 + $0x20] sm:$0xff]  ;;  %v490_v9 = vld [vmem:[%s2956_s2 + $0x8] sm:$0xff] }
  0x97   : > { %v445_v3 = vld [vmem:[%s2949_s14 + $0xa0] sm:$0xff] }
  0x98   : > { %547 = vmatpush.msra.mxu0 %v478_v10  ;;  %1948 = vmatpush.msra.mxu1 %v478_v10  ;;  %v469_v5 = vld [vmem:[%s2949_s14 + $0x160] sm:$0xff]  ;;  %v494_v10 = vld [vmem:[%s2956_s2 + $0x28] sm:$0xff] }
  0x9a   : > { %548 = vmatpush.msra.mxu0 %v477_v11  ;;  %1949 = vmatpush.msra.mxu1 %v477_v11 }
  0x9c   : > { %549 = vmatpush.msra.mxu0 %v476_v12  ;;  %1950 = vmatpush.msra.mxu1 %v476_v12  ;;  %v446_v12 = vld [vmem:[%s2949_s14 + $0xa8] sm:$0xff] }
  0x9e   : > { %550 = vmatpush.msra.mxu0 %v475_v13  ;;  %1951 = vmatpush.msra.mxu1 %v475_v13 }
  0xa0   : > { %551 = vmatpush.msra.mxu0 %v474_v14  ;;  %1952 = vmatpush.msra.mxu1 %v474_v14  ;;  %v470_v14 = vld [vmem:[%s2949_s14 + $0x168] sm:$0xff] }
  0xa2   : > { %552 = vmatpush.msra.mxu0 %v473_v15  ;;  %1953 = vmatpush.msra.mxu1 %v473_v15 }
  0xa3   : > { %553 = vmatmul.f32.vlgmr.msra.gmra.mxu0 %v425_v16  ;;  %625 = vmatmul.f32.vlgmr.msra.gmra.mxu1 %v449_v17 }
  0xab   : > { %556 = vmatmul.f32.gmra.mxu0 %v426_v18  ;;  %628 = vmatmul.f32.gmra.mxu1 %v450_v19  ;;  %v491_v18 = vld [vmem:[%s2956_s2 + $0x10] sm:$0xff] }
  0xac   : > { %v495_v19 = vld [vmem:[%s2956_s2 + $0x30] sm:$0xff] }
  0xb3   : > { %559 = vmatmul.f32.gmra.mxu0 %v427_v20  ;;  %631 = vmatmul.f32.gmra.mxu1 %v451_v21  ;;  %v447_v21 = vld [vmem:[%s2949_s14 + $0xb0] sm:$0xff] }
  0xbb   : > { %562 = vmatmul.f32.gmra.mxu0 %v428_v22  ;;  %634 = vmatmul.f32.gmra.mxu1 %v452_v23  ;;  %v471_v23 = vld [vmem:[%s2949_s14 + $0x170] sm:$0xff] }
  0xc3   : > { %565 = vmatmul.f32.gmra.mxu0 %v429_v24  ;;  %637 = vmatmul.f32.gmra.mxu1 %v453_v25 }
  0xcb   : > { %568 = vmatmul.f32.gmra.mxu0 %v430_v26  ;;  %640 = vmatmul.f32.gmra.mxu1 %v454_v27  ;;  %v492_v27 = vld [vmem:[%s2956_s2 + $0x18] sm:$0xff] }
  0xd3   : > { %571 = vmatmul.f32.gmra.mxu0 %v431_v28  ;;  %643 = vmatmul.f32.gmra.mxu1 %v455_v29  ;;  %v496_v28 = vld [vmem:[%s2956_s2 + $0x38] sm:$0xff] }
  0xdb   : > { %574 = vmatmul.f32.gmra.mxu0 %v432_v30  ;;  %646 = vmatmul.f32.gmra.mxu1 %v456_v31  ;;  %v448_v30 = vld [vmem:[%s2949_s14 + $0xb8] sm:$0xff] }
  0xe3   : > { %577 = vmatmul.f32.gmra.mxu0 %v433_v32  ;;  %649 = vmatmul.f32.gmra.mxu1 %v457_v33  ;;  %v472_v32 = vld [vmem:[%s2949_s14 + $0x178] sm:$0xff]  ;;  %s1568_s14 = scalar_lea.sflag [#allocation12], %s418_s4 }
  0xeb   : > { %580 = vmatmul.f32.gmra.mxu0 %v434_v34  ;;  %652 = vmatmul.f32.gmra.mxu1 %v458_v35  ;;  %v514_v35 = vld [vmem:[%s2956_s2 + $0xc8] sm:$0xff] }
  0xf3   : > { %583 = vmatmul.f32.gmra.mxu0 %v435_v36  ;;  %655 = vmatmul.f32.gmra.mxu1 %v459_v37  ;;  %v513_v37 = vld [vmem:[%s2956_s2 + $0xc0] sm:$0xff] }
  0xfb   : > { %586 = vmatmul.f32.gmra.mxu0 %v436_v38  ;;  %658 = vmatmul.f32.gmra.mxu1 %v460_v39  ;;  %v515_v38 = vld [vmem:[%s2956_s2 + $0xd0] sm:$0xff] }
 0x103   : > { %589 = vmatmul.f32.gmra.mxu0 %v437_v40  ;;  %661 = vmatmul.f32.gmra.mxu1 %v461_v41  ;;  %v516_v40 = vld [vmem:[%s2956_s2 + $0xd8] sm:$0xff]  ;;  %v497_v41 = vld [vmem:[%s2956_s2 + $0x40] sm:$0xff] }
 0x10b   : > { %592 = vmatmul.f32.gmra.mxu0 %v438_v42  ;;  %664 = vmatmul.f32.gmra.mxu1 %v462_v43 }
 0x113   : > { %595 = vmatmul.f32.gmra.mxu0 %v439_v44  ;;  %667 = vmatmul.f32.gmra.mxu1 %v463_v45  ;;  %v517_v44 = vld [vmem:[%s2956_s2 + $0xe0] sm:$0xff] }
 0x11b   : > { %598 = vmatmul.f32.gmra.mxu0 %v440_v46  ;;  %670 = vmatmul.f32.gmra.mxu1 %v464_v47 }
 0x120   : > { %v554_v48 = vpop.f32.mrf.mxu0  ;;  %v3017_v50 = vpop.f32.mrf.mxu1 }
 0x121   : > { %v3032_v6 = vadd.f32 %v554_v48, %v489_v0  ;;  %v3077_v42 = vadd.f32 %v3017_v50, %v513_v37  ;;  %v501_v37 = vld [vmem:[%s2956_s2 + $0x60] sm:$0xff] }
 0x123   : > { %601 = vmatmul.f32.gmra.mxu0 %v441_v49  ;;  %673 = vmatmul.f32.gmra.mxu1 %v465_v51  ;;  %v518_v51 = vld [vmem:[%s2956_s2 + $0xe8] sm:$0xff] }
 0x128   : > { %v557_v52 = vpop.f32.mrf.mxu0  ;;  %v3021_v54 = vpop.f32.mrf.mxu1 }
 0x129   : > { %v3042_v15 = vadd.f32 %v557_v52, %v490_v9  ;;  %v3072_v39 = vadd.f32 %v3021_v54, %v514_v35  ;;  %v519_v54 = vld [vmem:[%s2956_s2 + $0xf0] sm:$0xff] }
 0x12b   : > { %604 = vmatmul.f32.gmra.mxu0 %v442_v53  ;;  %676 = vmatmul.f32.gmra.mxu1 %v466_v55  ;;  %v718_v47 = vmax.f32 %v3072_v39, %v3077_v42 }
 0x130   : > { %v560_v56 = vpop.f32.mrf.mxu0  ;;  %v632_v58 = vpop.f32.mrf.mxu1 }
 0x131   : > { %v3052_v24 = vadd.f32 %v560_v56, %v491_v18  ;;  %v3079_v43 = vadd.f32 %v632_v58, %v515_v38  ;;  %v498_v58 = vld [vmem:[%s2956_s2 + $0x48] sm:$0xff] }
 0x133   : > { %607 = vmatmul.f32.gmra.mxu0 %v443_v57  ;;  %679 = vmatmul.f32.gmra.mxu1 %v467_v59  ;;  %v722_v52 = vmax.f32 %v718_v47, %v3079_v43  ;;  %v520_v57 = vld [vmem:[%s2956_s2 + $0xf8] sm:$0xff] }
 0x138   : > { %v563_v60 = vpop.f32.mrf.mxu0  ;;  %v635_v62 = vpop.f32.mrf.mxu1 }
 0x139   : > { %v3062_v33 = vadd.f32 %v563_v60, %v492_v27  ;;  %v3084_v48 = vadd.f32 %v635_v62, %v516_v40  ;;  %v521_v62 = vld [vmem:[%s2956_s2 + $0x100] sm:$0xff]  ;;  %v524_v27 = vld [vmem:[%s2956_s2 + $0x118] sm:$0xff] }
 0x13b   : > { %610 = vmatmul.f32.gmra.mxu0 %v444_v61  ;;  %682 = vmatmul.f32.gmra.mxu1 %v468_v63  ;;  %v719_v55 = vmax.f32 %v3084_v48, %v722_v52 }
 0x140   : > { %v566_v2 = vpop.f32.mrf.mxu0  ;;  %v638_v4 = vpop.f32.mrf.mxu1 }
 0x141   : > { %v3034_v7 = vadd.f32 %v566_v2, %v493_v1  ;;  %v3090_v50 = vadd.f32 %v638_v4, %v517_v44  ;;  %v502_v44 = vld [vmem:[%s2956_s2 + $0x68] sm:$0xff] }
 0x143   : > { %v698_v8 = vmax.f32 %v3032_v6, %v3034_v7  ;;  %613 = vmatmul.f32.gmra.mxu0 %v445_v3  ;;  %685 = vmatmul.f32.gmra.mxu1 %v469_v5  ;;  %v723_v59 = vmax.f32 %v719_v55, %v3090_v50  ;;  %v522_v3 = vld [vmem:[%s2956_s2 + $0x108] sm:$0xff] }
 0x148   : > { %v569_v11 = vpop.f32.mrf.mxu0  ;;  %v641_v13 = vpop.f32.mrf.mxu1 }
 0x149   : > { %v3044_v16 = vadd.f32 %v569_v11, %v494_v10  ;;  %v3097_v56 = vadd.f32 %v641_v13, %v518_v51  ;;  %v499_v11 = vld [vmem:[%s2956_s2 + $0x50] sm:$0xff] }
 0x14a   : > { %v503_v51 = vld [vmem:[%s2956_s2 + $0x70] sm:$0xff] }
 0x14b   : > { %v699_v17 = vmax.f32 %v3042_v15, %v3044_v16  ;;  %616 = vmatmul.f32.gmra.mxu0 %v446_v12  ;;  %688 = vmatmul.f32.gmra.mxu1 %v470_v14  ;;  %v726_v0 = vmax.f32 %v3097_v56, %v723_v59  ;;  %v523_v12 = vld [vmem:[%s2956_s2 + $0x110] sm:$0xff] }
 0x150   : > { %v572_v20 = vpop.f32.mrf.mxu0  ;;  %v644_v22 = vpop.f32.mrf.mxu1 }
 0x151   : > { %v3054_v25 = vadd.f32 %v572_v20, %v495_v19  ;;  %v3102_v60 = vadd.f32 %v644_v22, %v519_v54 }
 0x153   : > { %v700_v26 = vmax.f32 %v3052_v24, %v3054_v25  ;;  %619 = vmatmul.f32.gmra.mxu0 %v447_v21  ;;  %691 = vmatmul.f32.gmra.mxu1 %v471_v23  ;;  %v730_v4 = vmax.f32 %v726_v0, %v3102_v60  ;;  %v500_v23 = vld [vmem:[%s2956_s2 + $0x58] sm:$0xff]  ;;  %v525_v0 = vld [vmem:[%s2956_s2 + $0x120] sm:$0xff] }
 0x158   : > { %v575_v29 = vpop.f32.mrf.mxu0  ;;  %v647_v31 = vpop.f32.mrf.mxu1 }
 0x159   : > { %v3064_v34 = vadd.f32 %v575_v29, %v496_v28  ;;  %v3106_v1 = vadd.f32 %v647_v31, %v520_v57 }
 0x15b   : > { %v701_v36 = vmax.f32 %v3062_v33, %v3064_v34  ;;  %622 = vmatmul.f32.gmra.mxu0 %v448_v30  ;;  %694 = vmatmul.f32.gmra.mxu1 %v472_v32  ;;  %v734_v9 = vmax.f32 %v730_v4, %v3106_v1 }
 0x160   : > { %v578_v45 = vpop.f32.mrf.mxu0  ;;  %v650_v46 = vpop.f32.mrf.mxu1 }
 0x161   : > { %v3086_v49 = vadd.f32 %v578_v45, %v497_v41 }
 0x163   : > { %v3093_v53 = vmax.f32 %v698_v8, %v3086_v49  ;;  %v3115_v8 = vadd.f32 %v650_v46, %v521_v62 }
 0x165   : > { %v738_v13 = vmax.f32 %v734_v9, %v3115_v8 }
 0x168   : > { %v581_v61 = vpop.f32.mrf.mxu0  ;;  %v653_v63 = vpop.f32.mrf.mxu1 }
 0x169   : > { %v3108_v2 = vadd.f32 %v581_v61, %v498_v58  ;;  %v3118_v10 = vadd.f32 %v653_v63, %v522_v3 }
 0x16b   : > { %v3113_v5 = vmax.f32 %v699_v17, %v3108_v2  ;;  %v720_v20 = vmax.f32 %v3118_v10, %v738_v13  ;;  %v528_v13 = vld [vmem:[%s2956_s2 + $0x138] sm:$0xff] }
 0x170   : > { %v584_v14 = vpop.f32.mrf.mxu0  ;;  %v656_v18 = vpop.f32.mrf.mxu1 }
 0x171   : > { %v3123_v19 = vadd.f32 %v584_v14, %v499_v11  ;;  %v3126_v21 = vadd.f32 %v656_v18, %v523_v12  ;;  %v527_v11 = vld [vmem:[%s2956_s2 + $0x130] sm:$0xff] }
 0x173   : > { %v3129_v17 = vmax.f32 %v700_v26, %v3123_v19  ;;  %v724_v22 = vmax.f32 %v720_v20, %v3126_v21  ;;  %v529_v20 = vld [vmem:[%s2956_s2 + $0x140] sm:$0xff] }
 0x178   : > { %v587_v28 = vpop.f32.mrf.mxu0  ;;  %v659_v29 = vpop.f32.mrf.mxu1 }
 0x179   : > { %v3134_v30 = vadd.f32 %v587_v28, %v500_v23  ;;  %v3136_v31 = vadd.f32 %v659_v29, %v524_v27  ;;  %v505_v28 = vld [vmem:[%s2956_s2 + $0x80] sm:$0xff]  ;;  %v530_v29 = vld [vmem:[%s2956_s2 + $0x148] sm:$0xff] }
 0x17b   : > { %v3139_v32 = vmax.f32 %v701_v36, %v3134_v30  ;;  %v727_v35 = vmax.f32 %v3136_v31, %v724_v22 }
 0x180   : > { %v590_v38 = vpop.f32.mrf.mxu0  ;;  %v662_v26 = vpop.f32.mrf.mxu1 }
 0x181   : > { %v3143_v40 = vadd.f32 %v590_v38, %v501_v37  ;;  %v3161_v9 = vadd.f32 %v662_v26, %v525_v0  ;;  %v531_v26 = vld [vmem:[%s2956_s2 + $0x150] sm:$0xff] }
 0x183   : > { %v706_v41 = vmax.f32 %v3093_v53, %v3143_v40  ;;  %v731_v14 = vmax.f32 %v727_v35, %v3161_v9 }
 0x188   : > { %v593_v45 = vpop.f32.mrf.mxu0  ;;  %v665_v46 = vpop.f32.mrf.mxu1 }
 0x189   : > { %v3148_v47 = vadd.f32 %v593_v45, %v502_v44 }
 0x18b   : > { %v707_v36 = vmax.f32 %v3113_v5, %v3148_v47  ;;  %v526_v5 = vld [vmem:[%s2956_s2 + $0x128] sm:$0xff] }
 0x18c   : > { %v3164_v12 = vadd.f32 %v665_v46, %v526_v5  ;;  %v509_v46 = vld [vmem:[%s2956_s2 + $0xa0] sm:$0xff]  ;;  %v506_v5 = vld [vmem:[%s2956_s2 + $0x88] sm:$0xff] }
 0x18e   : > { %v735_v23 = vmax.f32 %v731_v14, %v3164_v12  ;;  %v532_v14 = vld [vmem:[%s2956_s2 + $0x158] sm:$0xff] }
 0x190   : > { %v596_v52 = vpop.f32.mrf.mxu0  ;;  %v668_v54 = vpop.f32.mrf.mxu1 }
 0x191   : > { %v3153_v55 = vadd.f32 %v596_v52, %v503_v51  ;;  %v3168_v18 = vadd.f32 %v668_v54, %v527_v11 }
 0x193   : > { %v708_v53 = vmax.f32 %v3129_v17, %v3153_v55  ;;  %v739_v37 = vmax.f32 %v735_v23, %v3168_v18 }
 0x198   : > { %v3157_v57 = vpop.f32.mrf.mxu0  ;;  %v671_v58 = vpop.f32.mrf.mxu1 }
 0x199   : > { %v3172_v27 = vadd.f32 %v671_v58, %v528_v13 }
 0x19b   : > { %v742_v35 = vmax.f32 %v3172_v27, %v739_v37 }
 0x1a0   : > { %v602_v59 = vpop.f32.mrf.mxu0  ;;  %v674_v61 = vpop.f32.mrf.mxu1 }
 0x1a1   : > { %v3177_v38 = vadd.f32 %v674_v61, %v529_v20  ;;  %v3180_v44 = vadd.f32 %v602_v59, %v505_v28  ;;  %v510_v20 = vld [vmem:[%s2956_s2 + $0xa8] sm:$0xff] }
 0x1a3   : > { %v721_v51 = vmax.f32 %v3177_v38, %v742_v35  ;;  %v710_v61 = vmax.f32 %v706_v41, %v3180_v44 }
 0x1a8   : > { %v605_v62 = vpop.f32.mrf.mxu0  ;;  %v677_v63 = vpop.f32.mrf.mxu1 }
 0x1a9   : > { %v3183_v45 = vadd.f32 %v677_v63, %v530_v29  ;;  %v3196_v13 = vadd.f32 %v605_v62, %v506_v5 }
 0x1ab   : > { %v725_v0 = vmax.f32 %v721_v51, %v3183_v45  ;;  %v711_v41 = vmax.f32 %v707_v36, %v3196_v13 }
 0x1b0   : > { %v608_v3 = vpop.f32.mrf.mxu0  ;;  %v680_v4 = vpop.f32.mrf.mxu1 }
 0x1b1   : > { %v3187_v52 = vadd.f32 %v680_v4, %v531_v26  ;;  %v507_v26 = vld [vmem:[%s2956_s2 + $0x90] sm:$0xff] }
 0x1b2   : > { %v3208_v62 = vadd.f32 %v608_v3, %v507_v26  ;;  %v534_v26 = vld [vmem:[%s2956_s2 + $0x168] sm:$0xff] }
 0x1b3   : > { %v728_v11 = vmax.f32 %v3187_v52, %v725_v0  ;;  %v504_v0 = vld [vmem:[%s2956_s2 + $0x78] sm:$0xff] }
 0x1b4   : > { %v3220_v3 = vadd.f32 %v3157_v57, %v504_v0  ;;  %v751_v57 = vlaneseq  ;;  %v535_v0 = vld [vmem:[%s2956_s2 + $0x170] sm:$0xff] }
 0x1b8   : > { %v611_v17 = vpop.f32.mrf.mxu0  ;;  %v683_v22 = vpop.f32.mrf.mxu1 }
 0x1b9   : > { %v3201_v29 = vadd.f32 %v683_v22, %v532_v14  ;;  %v712_v22 = vmax.f32 %v708_v53, %v3208_v62  ;;  %v709_v53 = vmax.f32 %v3139_v32, %v3220_v3  ;;  %v3243_v32 = vshrl.u32 %v751_v57, 7 }
 0x1bb   : > { %v3263_v57 = vadd.s32 208, %v3243_v32 }
 0x1bd   : > { %4990 = vst [vmem:[#allocation50_spill] sm:$0xff] %v3263_v57  ;;  %v3284_v57 = vadd.s32 56, %v3243_v32 }
 0x1bf   : > { %4997 = vst [vmem:[#allocation57_spill] sm:$0xff] %v3284_v57  ;;  %v3305_v57 = vadd.s32 264, %v3243_v32 }
 0x1c0   : > { %v614_v54 = vpop.f32.mrf.mxu0  ;;  %v686_v58 = vpop.f32.mrf.mxu1 }
 0x1c1   : > { %v3191_v59 = vadd.f32 %v614_v54, %v509_v46  ;;  %v533_v54 = vld [vmem:[%s2956_s2 + $0x160] sm:$0xff]  ;;  %5004 = vst [vmem:[#allocation64_spill] sm:$0xff] %v3305_v57  ;;  %v3326_v57 = vadd.s32 112, %v3243_v32 }
 0x1c3   : > { %v714_v63 = vmax.f32 %v710_v61, %v3191_v59  ;;  %v511_v61 = vld [vmem:[%s2956_s2 + $0xb0] sm:$0xff]  ;;  %5011 = vst [vmem:[#allocation71_spill] sm:$0xff] %v3326_v57  ;;  %v3347_v57 = vadd.s32 320, %v3243_v32 }
 0x1c5   : > { %v732_v4 = vmax.f32 %v728_v11, %v714_v63  ;;  %v3214_v11 = vadd.f32 %v686_v58, %v533_v54  ;;  %5018 = vst [vmem:[#allocation78_spill] sm:$0xff] %v3347_v57  ;;  %v3370_v57 = vadd.s32 168, %v3243_v32 }
 0x1c7   : > { %v736_v35 = vmax.f32 %v732_v4, %v3201_v29  ;;  %v508_v4 = vld [vmem:[%s2956_s2 + $0x98] sm:$0xff]  ;;  %5025 = vst [vmem:[#allocation85_spill] sm:$0xff] %v3370_v57 }
 0x1c8   : > { %v617_v23 = vpop.f32.mrf.mxu0  ;;  %v689_v28 = vpop.f32.mrf.mxu1 }
 0x1c9   : > { %v3203_v37 = vadd.f32 %v617_v23, %v510_v20  ;;  %v3224_v23 = vadd.f32 %v611_v17, %v508_v4  ;;  %v3231_v54 = vadd.f32 %v689_v28, %v534_v26 }
 0x1cb   : > { %v715_v46 = vmax.f32 %v711_v41, %v3203_v37  ;;  %4983 = vst [vmem:[#allocation43_spill] sm:$0xff] %v3231_v54 }
 0x1cd   : > { %v740_v51 = vmax.f32 %v736_v35, %v715_v46  ;;  %v512_v35 = vld [vmem:[%s2956_s2 + $0xb8] sm:$0xff]  ;;  %v713_v46 = vmax.f32 %v709_v53, %v3224_v23  ;;  %v3251_v53 = vadd.s32 192, %v3243_v32 }
 0x1cf   : > { %v729_v14 = vmax.f32 %v3214_v11, %v740_v51  ;;  %v536_v51 = vld [vmem:[%s2956_s2 + $0x178] sm:$0xff]  ;;  %4986 = vst [vmem:[#allocation46_spill] sm:$0xff] %v3251_v53  ;;  %v3293_v53 = vadd.s32 248, %v3243_v32  ;;  %s2421_s2 = scalar_lea.hbm %s2420_s21, 192 }
 0x1d0   : > { %v620_v5 = vpop.f32.mrf.mxu0  ;;  %v692_v36 = vpop.f32.mrf.mxu1  ;;  %p2422_p6 = scmp.ne.s32.totalorder %s2420_s21, %s2421_s2  ;;  %p2427_p4 = scmp.lt.s32.totalorder %s2425_s27, %s2421_s2 }
 0x1d1   : > { %v3216_v63 = vadd.f32 %v620_v5, %v511_v61  ;;  %5000 = vst [vmem:[#allocation60_spill] sm:$0xff] %v3293_v53  ;;  %v3314_v53 = vadd.s32 96, %v3243_v32 }
 0x1d2   : > { %p2423_p7 = pnand %p2422_p6, %p2877_p3  ;;  %p2428_p9 = por %p2427_p4, %p2426_p2 }
 0x1d3   : > { %v716_v20 = vmax.f32 %v712_v22, %v3216_v63  ;;  %5007 = vst [vmem:[#allocation67_spill] sm:$0xff] %v3314_v53  ;;  %v3335_v53 = vadd.s32 304, %v3243_v32 }
 0x1d4   : > { %p2424_p10 = pneg %p2423_p7 }
 0x1d5   : > { %v733_v41 = vmax.f32 %v729_v14, %v716_v20  ;;  %v3239_v14 = vadd.f32 %v692_v36, %v535_v0  ;;  %v3257_v36 = vadd.s32 200, %v3243_v32  ;;  %v3266_v0 = vadd.s32 32, %v3243_v32  ;;  %5014 = vst [vmem:[#allocation74_spill] sm:$0xff] %v3335_v53 }
 0x1d6   : > { %v3356_v53 = vadd.s32 152, %v3243_v32  ;;  %p2429_p11 = pnand %p2428_p9, %p2424_p10 }
 0x1d7   : > { %v737_v17 = vmax.f32 %v733_v41, %v3231_v54  ;;  %v3254_v41 = vadd.s32 16, %v3243_v32  ;;  %4988 = vst [vmem:[#allocation48_spill] sm:$0xff] %v3257_v36  ;;  %v3287_v36 = vadd.s32 240, %v3243_v32 }
 0x1d8   : > { %v623_v58 = vpop.f32.mrf.mxu0  ;;  %v695_v5 = vpop.f32.mrf.mxu1  ;;  %4991 = vst [vmem:[#allocation51_spill] sm:$0xff] %v3266_v0 }
 0x1d9   : > { %v3233_v61 = vadd.f32 %v623_v58, %v512_v35  ;;  %v3241_v20 = vadd.f32 %v695_v5, %v536_v51  ;;  %v3248_v35 = vadd.s32 8, %v3243_v32  ;;  %4987 = vst [vmem:[#allocation47_spill] sm:$0xff] %v3254_v41  ;;  %v3269_v51 = vadd.s32 216, %v3243_v32 }
 0x1da   : > { %v3272_v5 = vadd.s32 40, %v3243_v32  ;;  %4998 = vst [vmem:[#allocation58_spill] sm:$0xff] %v3287_v36  ;;  %v3308_v36 = vadd.s32 88, %v3243_v32 }
 0x1db   : > { %v717_v22 = vmax.f32 %v713_v46, %v3233_v61  ;;  %4984 = vst [vmem:[#allocation44_spill] sm:$0xff] %v3241_v20  ;;  %v3260_v46 = vadd.s32 24, %v3243_v32 }
 0x1dc   : > { %4985 = vst [vmem:[#allocation45_spill] sm:$0xff] %v3248_v35 }
 0x1dd   : > { %v741_v4 = vmax.f32 %v737_v17, %v717_v22  ;;  %4989 = vst [vmem:[#allocation49_spill] sm:$0xff] %v3260_v46  ;;  %v3275_v17 = vadd.s32 224, %v3243_v32  ;;  %v3278_v22 = vadd.s32 48, %v3243_v32 }
 0x1de   : > { %4992 = vst [vmem:[#allocation52_spill] sm:$0xff] %v3269_v51  ;;  %v3290_v51 = vadd.s32 64, %v3243_v32 }
 0x1df   : > { %v743_v28 = vmax.f32 %v3239_v14, %v741_v4  ;;  %4993 = vst [vmem:[#allocation53_spill] sm:$0xff] %v3272_v5 }
 0x1e0   : > { %4994 = vst [vmem:[#allocation54_spill] sm:$0xff] %v3275_v17  ;;  %v3296_v17 = vadd.s32 72, %v3243_v32 }
 0x1e1   : > { %v744_v26 = vmax.f32 %v3241_v20, %v743_v28  ;;  %4995 = vst [vmem:[#allocation55_spill] sm:$0xff] %v3278_v22  ;;  %v3281_v28 = vadd.s32 232, %v3243_v32 }
 0x1e2   : > { %4999 = vst [vmem:[#allocation59_spill] sm:$0xff] %v3290_v51  ;;  %v3311_v51 = vadd.s32 272, %v3243_v32 }
 0x1e3   : > { %v745_v58 = vrot.slane %v744_v26, 4  ;;  %4996 = vst [vmem:[#allocation56_spill] sm:$0xff] %v3281_v28  ;;  %v3302_v28 = vadd.s32 80, %v3243_v32 }
 0x1e4   : > { %5001 = vst [vmem:[#allocation61_spill] sm:$0xff] %v3296_v17  ;;  %v3317_v17 = vadd.s32 280, %v3243_v32 }
 0x1e5   : > { %v746_v4 = vmax.f32 %v744_v26, %v745_v58  ;;  %v3299_v26 = vadd.s32 256, %v3243_v32  ;;  %5003 = vst [vmem:[#allocation63_spill] sm:$0xff] %v3302_v28  ;;  %v3323_v28 = vadd.s32 288, %v3243_v32 }
 0x1e6   : > { %5005 = vst [vmem:[#allocation65_spill] sm:$0xff] %v3308_v36  ;;  %v3329_v36 = vadd.s32 296, %v3243_v32 }
 0x1e7   : > { %5002 = vst [vmem:[#allocation62_spill] sm:$0xff] %v3299_v26  ;;  %v747_v58 = vrot.slane %v746_v4, 2  ;;  %v3320_v26 = vadd.s32 104, %v3243_v32 }
 0x1e8   : > { %5006 = vst [vmem:[#allocation66_spill] sm:$0xff] %v3311_v51  ;;  %v3332_v51 = vadd.s32 120, %v3243_v32 }
 0x1e9   : > { %5008 = vst [vmem:[#allocation68_spill] sm:$0xff] %v3317_v17  ;;  %v748_v22 = vmax.f32 %v746_v4, %v747_v58  ;;  %v3338_v17 = vadd.s32 128, %v3243_v32  ;;  %v3341_v4 = vadd.s32 312, %v3243_v32 }
 0x1ea   : > { %5009 = vst [vmem:[#allocation69_spill] sm:$0xff] %v3320_v26 }
 0x1eb   : > { %5010 = vst [vmem:[#allocation70_spill] sm:$0xff] %v3323_v28  ;;  %v749_v58 = vrot.slane %v748_v22, 1  ;;  %v3344_v28 = vadd.s32 136, %v3243_v32 }
 0x1ec   : > { %5012 = vst [vmem:[#allocation72_spill] sm:$0xff] %v3329_v36  ;;  %v3350_v36 = vadd.s32 144, %v3243_v32 }
 0x1ed   : > { %5013 = vst [vmem:[#allocation73_spill] sm:$0xff] %v3332_v51  ;;  %v3353_v51 = vadd.s32 328, %v3243_v32  ;;  %v3364_v26 = vmax.f32 %v748_v22, %v749_v58  ;;  %v3403_v22 = vadd.s32 360, %v3243_v32  ;;  %v3412_v58 = vadd.s32 184, %v3243_v32 }
 0x1ee   : > { %5015 = vst [vmem:[#allocation75_spill] sm:$0xff] %v3338_v17  ;;  %v3359_v17 = vadd.s32 336, %v3243_v32 }
 0x1ef   : > { %5016 = vst [vmem:[#allocation76_spill] sm:$0xff] %v3341_v4  ;;  %v3362_v4 = vadd.s32 160, %v3243_v32  ;;  %vm800_vm0 = vcmp.eq.f32.partialorder %v3032_v6, %v3364_v26  ;;  %vm801_vm1 = vcmp.eq.f32.partialorder %v3042_v15, %v3364_v26  ;;  %vm802_vm2 = vcmp.eq.f32.partialorder %v3052_v24, %v3364_v26 }
 0x1f0   : > { %5017 = vst [vmem:[#allocation77_spill] sm:$0xff] %v3344_v28  ;;  %v3367_v28 = vadd.s32 344, %v3243_v32  ;;  %vm803_vm3 = vcmp.eq.f32.partialorder %v3062_v33, %v3364_v26  ;;  %vm804_vm4 = vcmp.eq.f32.partialorder %v3034_v7, %v3364_v26  ;;  %vm805_vm5 = vcmp.eq.f32.partialorder %v3044_v16, %v3364_v26 }
 0x1f1   : > { %5019 = vst [vmem:[#allocation79_spill] sm:$0xff] %v3350_v36  ;;  %v3373_v36 = vadd.s32 352, %v3243_v32  ;;  %vm806_vm6 = vcmp.eq.f32.partialorder %v3054_v25, %v3364_v26  ;;  %vm807_vm7 = vcmp.eq.f32.partialorder %v3064_v34, %v3364_v26  ;;  %vm808_vm8 = vcmp.eq.f32.partialorder %v3086_v49, %v3364_v26 }
 0x1f2   : > { %5020 = vst [vmem:[#allocation80_spill] sm:$0xff] %v3353_v51  ;;  %v3376_v51 = vadd.s32 176, %v3243_v32  ;;  %vm841_vm10 = vcmp.eq.f32.partialorder %v3183_v45, %v3364_v26  ;;  %vm842_vm9 = vcmp.eq.f32.partialorder %v3187_v52, %v3364_v26  ;;  %vm843_vm15 = vcmp.eq.f32.partialorder %v3201_v29, %v3364_v26 }
 0x1f3   : > { %5021 = vst [vmem:[#allocation81_spill] sm:$0xff] %v3356_v53  ;;  %vm844_vm12 = vcmp.eq.f32.partialorder %v3214_v11, %v3364_v26  ;;  %vm845_vm13 = vcmp.eq.f32.partialorder %v3231_v54, %v3364_v26  ;;  %vm846_vm14 = vcmp.eq.f32.partialorder %v3239_v14, %v3364_v26  ;;  %vm847_vm11 = vcmp.eq.f32.partialorder %v3241_v20, %v3364_v26 }
 0x1f4   : > { %5022 = vst [vmem:[#allocation82_spill] sm:$0xff] %v3359_v17  ;;  %v850_v54 = vsel %vm802_vm2, %v3254_v41, 384  ;;  %v851_v20 = vsel %vm803_vm3, %v3260_v46, 384  ;;  %v852_v6 = vsel %vm804_vm4, %v3266_v0, 384  ;;  %v853_v15 = vsel %vm805_vm5, %v3272_v5, 384  ;;  %v5033_v41 = vld [vmem:[#allocation57_spill] sm:$0xff] }
 0x1f5   : > { %5023 = vst [vmem:[#allocation83_spill] sm:$0xff] %v3362_v4  ;;  %v855_v33 = vsel %vm807_vm7, %v5033_v41, 384  ;;  %v5034_v46 = vld [vmem:[#allocation59_spill] sm:$0xff]  ;;  %v5035_v0 = vld [vmem:[#allocation61_spill] sm:$0xff]  ;;  %vm5040_vm2 = vcmp.eq.f32.partialorder %v3134_v30, %v3364_v26  ;;  %vm5042_vm3 = vcmp.eq.f32.partialorder %v3143_v40, %v3364_v26  ;;  %vm5044_vm4 = vcmp.eq.f32.partialorder %v3148_v47, %v3364_v26 }
 0x1f6   : > { %5024 = vst [vmem:[#allocation84_spill] sm:$0xff] %v3367_v28  ;;  %v3418_v28 = vadd.s32 376, %v3243_v32  ;;  %v856_v7 = vsel %vm808_vm8, %v5034_v46, 384  ;;  %v5037_v5 = vld [vmem:[#allocation63_spill] sm:$0xff]  ;;  %v5043_v46 = vld [vmem:[#allocation69_spill] sm:$0xff]  ;;  %vm5046_vm5 = vcmp.eq.f32.partialorder %v3153_v55, %v3364_v26  ;;  %vm5050_vm7 = vcmp.eq.f32.partialorder %v3180_v44, %v3364_v26 }
 0x1f7   : > { %5026 = vst [vmem:[#allocation86_spill] sm:$0xff] %v3373_v36  ;;  %v3415_v36 = vadd.s32 368, %v3243_v32  ;;  %v5041_v41 = vld [vmem:[#allocation67_spill] sm:$0xff]  ;;  %vm5052_vm8 = vcmp.eq.f32.partialorder %v3196_v13, %v3364_v26 }
 0x1f8   : > { %5027 = vst [vmem:[#allocation87_spill] sm:$0xff] %v3376_v51  ;;  %v860_v49 = vsel %vm5042_vm3, %v5041_v41, 384  ;;  %v5051_v41 = vld [vmem:[#allocation77_spill] sm:$0xff]  ;;  %vm5057_vm3 = vcmp.eq.f32.partialorder %v3203_v37, %v3364_v26  ;;  %v5062_v37 = vld [vmem:[#allocation48_spill] sm:$0xff] }
 0x1f9   : > { %5028 = vst [vmem:[#allocation88_spill] sm:$0xff] %v3403_v22  ;;  %v865_v47 = vsel %vm5052_vm8, %v5051_v41, 384  ;;  %v3576_v13 = vsel %vm5057_vm3, %v3370_v57, 384  ;;  %vm5065_vm8 = vcmp.eq.f32.partialorder %v3079_v43, %v3364_v26  ;;  %v5072_v43 = vld [vmem:[#allocation58_spill] sm:$0xff]  ;;  %vm5073_vm3 = vcmp.eq.f32.partialorder %v3102_v60, %v3364_v26 }
 0x1fa   : > { %5029 = vst [vmem:[#allocation89_spill] sm:$0xff] %v3412_v58  ;;  %v5080_v60 = vld [vmem:[#allocation66_spill] sm:$0xff] }
 0x1fb   : > { %5030 = vst [vmem:[#allocation90_spill] sm:$0xff] %v3415_v36  ;;  %v849_v36 = vsel %vm801_vm1, %v3248_v35, 384  ;;  %v5032_v35 = vld [vmem:[#allocation55_spill] sm:$0xff]  ;;  %vm5038_vm1 = vcmp.eq.f32.partialorder %v3123_v19, %v3364_v26 }
 0x1fc   : > { %5031 = vst [vmem:[#allocation91_spill] sm:$0xff] %v3418_v28  ;;  %v848_v28 = vsel %vm800_vm0, %v3243_v32, 384  ;;  %v854_v24 = vsel %vm806_vm6, %v5032_v35, 384  ;;  %vm5036_vm0 = vcmp.eq.f32.partialorder %v3108_v2, %v3364_v26  ;;  %v858_v25 = vsel %vm5038_vm1, %v5037_v5, 384  ;;  %v5039_v35 = vld [vmem:[#allocation65_spill] sm:$0xff] }
 0x1fd   : > { %v857_v16 = vsel %vm5036_vm0, %v5035_v0, 384  ;;  %v859_v34 = vsel %vm5040_vm2, %v5039_v35, 384  ;;  %v861_v2 = vsel %vm5044_vm4, %v5043_v46, 384  ;;  %v5045_v0 = vld [vmem:[#allocation71_spill] sm:$0xff]  ;;  %v5047_v5 = vld [vmem:[#allocation73_spill] sm:$0xff]  ;;  %vm5048_vm6 = vcmp.eq.f32.partialorder %v3220_v3, %v3364_v26 }
 0x1fe   : > { %v862_v19 = vsel %vm5046_vm5, %v5045_v0, 384  ;;  %v863_v30 = vsel %vm5048_vm6, %v5047_v5, 384  ;;  %v5049_v35 = vld [vmem:[#allocation75_spill] sm:$0xff]  ;;  %vm5054_vm0 = vcmp.eq.f32.partialorder %v3208_v62, %v3364_v26  ;;  %vm5055_vm1 = vcmp.eq.f32.partialorder %v3224_v23, %v3364_v26 }
 0x1ff   : > { %v864_v40 = vsel %vm5050_vm7, %v5049_v35, 384  ;;  %v5053_v46 = vld [vmem:[#allocation79_spill] sm:$0xff]  ;;  %v867_v3 = vsel %vm5055_vm1, %v3356_v53, 384  ;;  %vm5056_vm2 = vcmp.eq.f32.partialorder %v3191_v59, %v3364_v26  ;;  %vm5058_vm4 = vcmp.eq.f32.partialorder %v3216_v63, %v3364_v26  ;;  %v5060_v59 = vld [vmem:[#allocation46_spill] sm:$0xff] }
 0x200   : > { %v866_v55 = vsel %vm5054_vm0, %v5053_v46, 384  ;;  %v3570_v44 = vsel %vm5056_vm2, %v3362_v4, 384  ;;  %v3582_v62 = vsel %vm5058_vm4, %v3376_v51, 384  ;;  %vm5059_vm5 = vcmp.eq.f32.partialorder %v3233_v61, %v3364_v26  ;;  %v5064_v63 = vld [vmem:[#allocation50_spill] sm:$0xff]  ;;  %v5066_v61 = vld [vmem:[#allocation52_spill] sm:$0xff] }
 0x201   : > { %v3588_v23 = vsel %vm5059_vm5, %v3412_v58, 384  ;;  %vm5061_vm6 = vcmp.eq.f32.partialorder %v3077_v42, %v3364_v26  ;;  %vm5063_vm7 = vcmp.eq.f32.partialorder %v3072_v39, %v3364_v26  ;;  %v3606_v51 = vsel %vm5065_vm8, %v5064_v63, 384  ;;  %v5068_v42 = vld [vmem:[#allocation54_spill] sm:$0xff]  ;;  %v5070_v39 = vld [vmem:[#allocation56_spill] sm:$0xff] }
 0x202   : > { %v3594_v4 = vsel %vm5061_vm6, %v5060_v59, 384  ;;  %v3600_v57 = vsel %vm5063_vm7, %v5062_v37, 384  ;;  %vm5067_vm0 = vcmp.eq.f32.partialorder %v3084_v48, %v3364_v26  ;;  %vm5069_vm1 = vcmp.eq.f32.partialorder %v3090_v50, %v3364_v26  ;;  %v5074_v48 = vld [vmem:[#allocation60_spill] sm:$0xff]  ;;  %v5076_v50 = vld [vmem:[#allocation62_spill] sm:$0xff] }
 0x203   : > { %v3612_v58 = vsel %vm5067_vm0, %v5066_v61, 384  ;;  %v3618_v59 = vsel %vm5069_vm1, %v5068_v42, 384  ;;  %vm5071_vm2 = vcmp.eq.f32.partialorder %v3097_v56, %v3364_v26  ;;  %v3630_v63 = vsel %vm5073_vm3, %v5072_v43, 384  ;;  %v5078_v56 = vld [vmem:[#allocation64_spill] sm:$0xff]  ;;  %v5098_v52 = vld [vmem:[#allocation90_spill] sm:$0xff]  ;;  %v5099_v29 = vld [vmem:[#allocation91_spill] sm:$0xff] }
 0x204   : > { %v3624_v37 = vsel %vm5071_vm2, %v5070_v39, 384  ;;  %vm5075_vm4 = vcmp.eq.f32.partialorder %v3106_v1, %v3364_v26  ;;  %vm5077_vm5 = vcmp.eq.f32.partialorder %v3115_v8, %v3364_v26  ;;  %vm5079_vm6 = vcmp.eq.f32.partialorder %v3118_v10, %v3364_v26  ;;  %v5082_v1 = vld [vmem:[#allocation68_spill] sm:$0xff]  ;;  %v5084_v8 = vld [vmem:[#allocation70_spill] sm:$0xff] }
 0x205   : > { %v3636_v61 = vsel %vm5075_vm4, %v5074_v48, 384  ;;  %v3642_v42 = vsel %vm5077_vm5, %v5076_v50, 384  ;;  %v3648_v39 = vsel %vm5079_vm6, %v5078_v56, 384  ;;  %vm5081_vm7 = vcmp.eq.f32.partialorder %v3126_v21, %v3364_v26  ;;  %v5086_v10 = vld [vmem:[#allocation72_spill] sm:$0xff]  ;;  %v5088_v21 = vld [vmem:[#allocation74_spill] sm:$0xff] }
 0x206   : > { %v3654_v43 = vsel %vm5081_vm7, %v5080_v60, 384  ;;  %vm5083_vm8 = vcmp.eq.f32.partialorder %v3136_v31, %v3364_v26  ;;  %vm5085_vm0 = vcmp.eq.f32.partialorder %v3161_v9, %v3364_v26  ;;  %vm5087_vm1 = vcmp.eq.f32.partialorder %v3164_v12, %v3364_v26  ;;  %v5090_v31 = vld [vmem:[#allocation76_spill] sm:$0xff]  ;;  %v5092_v9 = vld [vmem:[#allocation78_spill] sm:$0xff] }
 0x207   : > { %v3660_v48 = vsel %vm5083_vm8, %v5082_v1, 384  ;;  %v3666_v53 = vsel %vm5085_vm0, %v5084_v8, 384  ;;  %v3672_v46 = vsel %vm5087_vm1, %v5086_v10, 384  ;;  %vm5089_vm2 = vcmp.eq.f32.partialorder %v3168_v18, %v3364_v26  ;;  %v5094_v12 = vld [vmem:[#allocation80_spill] sm:$0xff] }
 0x208   : > { %v3678_v60 = vsel %vm5089_vm2, %v5088_v21, 384  ;;  %vm5091_vm3 = vcmp.eq.f32.partialorder %v3172_v27, %v3364_v26  ;;  %vm5093_vm4 = vcmp.eq.f32.partialorder %v3177_v38, %v3364_v26  ;;  %v3696_v10 = vsel %vm841_vm10, %v5094_v12, 384  ;;  %v5095_v27 = vld [vmem:[#allocation84_spill] sm:$0xff]  ;;  %v5096_v38 = vld [vmem:[#allocation86_spill] sm:$0xff] }
 0x209   : > { %v3684_v1 = vsel %vm5091_vm3, %v5090_v31, 384  ;;  %v3690_v8 = vsel %vm5093_vm4, %v5092_v9, 384  ;;  %v3702_v18 = vsel %vm842_vm9, %v3359_v17, 384  ;;  %v3708_v21 = vsel %vm843_vm15, %v5095_v27, 384 }
 0x20a   : > { %v3714_v31 = vsel %vm844_vm12, %v5096_v38, 384  ;;  %v3720_v9 = vsel %vm845_vm13, %v3403_v22, 384  ;;  %v3726_v12 = vsel %vm846_vm14, %v5098_v52, 384  ;;  %v3732_v17 = vsel %vm847_vm11, %v5099_v29, 384 }
 0x20b   : > { %vm896_vm9 = vcmp.lt.s32.totalorder %v848_v28, %v852_v6  ;;  %vm898_vm10 = vcmp.lt.s32.totalorder %v849_v36, %v853_v15  ;;  %vm900_vm12 = vcmp.lt.s32.totalorder %v850_v54, %v854_v24  ;;  %vm902_vm15 = vcmp.lt.s32.totalorder %v851_v20, %v855_v33 }
 0x20c   : > { %v897_v11 = vsel %vm896_vm9, %v848_v28, %v852_v6  ;;  %v899_v45 = vsel %vm898_vm10, %v849_v36, %v853_v15  ;;  %v901_v38 = vsel %vm900_vm12, %v850_v54, %v854_v24  ;;  %v903_v22 = vsel %vm902_vm15, %v851_v20, %v855_v33 }
 0x20d   : > { %vm904_vm13 = vcmp.lt.s32.totalorder %v897_v11, %v856_v7  ;;  %vm906_vm5 = vcmp.lt.s32.totalorder %v899_v45, %v857_v16  ;;  %vm908_vm6 = vcmp.lt.s32.totalorder %v901_v38, %v858_v25  ;;  %vm910_vm7 = vcmp.lt.s32.totalorder %v903_v22, %v859_v34 }
 0x20e   : > { %v905_v14 = vsel %vm904_vm13, %v897_v11, %v856_v7  ;;  %v907_v52 = vsel %vm906_vm5, %v899_v45, %v857_v16  ;;  %v909_v41 = vsel %vm908_vm6, %v901_v38, %v858_v25  ;;  %v911_v56 = vsel %vm910_vm7, %v903_v22, %v859_v34  ;;  %v5106_v38 = vld [vmem:[#allocation67_spill] sm:$0xff] }
 0x20f   : > { %vm912_vm14 = vcmp.lt.s32.totalorder %v905_v14, %v860_v49  ;;  %vm914_vm8 = vcmp.lt.s32.totalorder %v907_v52, %v861_v2  ;;  %vm916_vm11 = vcmp.lt.s32.totalorder %v909_v41, %v862_v19  ;;  %vm918_vm0 = vcmp.lt.s32.totalorder %v911_v56, %v863_v30  ;;  %v5108_v11 = vld [vmem:[#allocation63_spill] sm:$0xff] }
 0x210   : > { %v913_v26 = vsel %vm912_vm14, %v905_v14, %v860_v49  ;;  %v915_v27 = vsel %vm914_vm8, %v907_v52, %v861_v2  ;;  %v917_v29 = vsel %vm916_vm11, %v909_v41, %v862_v19  ;;  %v919_v0 = vsel %vm918_vm0, %v911_v56, %v863_v30  ;;  %v5107_v52 = vld [vmem:[#allocation65_spill] sm:$0xff]  ;;  %v5109_v45 = vld [vmem:[#allocation47_spill] sm:$0xff] }
 0x211   : > { %vm920_vm1 = vcmp.lt.s32.totalorder %v913_v26, %v864_v40  ;;  %vm922_vm2 = vcmp.lt.s32.totalorder %v915_v27, %v865_v47  ;;  %vm924_vm3 = vcmp.lt.s32.totalorder %v917_v29, %v866_v55  ;;  %vm926_vm4 = vcmp.lt.s32.totalorder %v919_v0, %v867_v3  ;;  %v5110_v14 = vld [vmem:[#allocation79_spill] sm:$0xff] }
 0x212   : > { %v921_v54 = vsel %vm920_vm1, %v913_v26, %v864_v40  ;;  %v923_v20 = vsel %vm922_vm2, %v915_v27, %v865_v47  ;;  %v925_v36 = vsel %vm924_vm3, %v917_v29, %v866_v55  ;;  %v927_v28 = vsel %vm926_vm4, %v919_v0, %v867_v3 }
 0x213   : > { %vm928_vm9 = vcmp.lt.s32.totalorder %v921_v54, %v3570_v44  ;;  %vm930_vm10 = vcmp.lt.s32.totalorder %v923_v20, %v3576_v13  ;;  %vm932_vm12 = vcmp.lt.s32.totalorder %v925_v36, %v3582_v62  ;;  %vm934_vm15 = vcmp.lt.s32.totalorder %v927_v28, %v3588_v23 }
 0x214   : > { %v929_v22 = vsel %vm928_vm9, %v921_v54, %v3570_v44  ;;  %v931_v41 = vsel %vm930_vm10, %v923_v20, %v3576_v13  ;;  %v933_v6 = vsel %vm932_vm12, %v925_v36, %v3582_v62  ;;  %v935_v15 = vsel %vm934_vm15, %v927_v28, %v3588_v23  ;;  %v5111_v54 = vld [vmem:[#allocation61_spill] sm:$0xff]  ;;  %v5112_v20 = vld [vmem:[#allocation59_spill] sm:$0xff] }
 0x215   : > { %vm936_vm13 = vcmp.lt.s32.totalorder %v929_v22, %v3594_v4  ;;  %vm938_vm5 = vcmp.lt.s32.totalorder %v931_v41, %v3600_v57  ;;  %vm940_vm6 = vcmp.lt.s32.totalorder %v933_v6, %v3606_v51  ;;  %vm942_vm7 = vcmp.lt.s32.totalorder %v935_v15, %v3612_v58 }
 0x216   : > { %v937_v0 = vsel %vm936_vm13, %v929_v22, %v3594_v4  ;;  %v939_v24 = vsel %vm938_vm5, %v931_v41, %v3600_v57  ;;  %v941_v33 = vsel %vm940_vm6, %v933_v6, %v3606_v51  ;;  %v943_v7 = vsel %vm942_vm7, %v935_v15, %v3612_v58  ;;  %v5113_v22 = vld [vmem:[#allocation51_spill] sm:$0xff]  ;;  %v5114_v41 = vld [vmem:[#allocation49_spill] sm:$0xff]  ;;  %v5116_v15 = vld [vmem:[#allocation66_spill] sm:$0xff] }
 0x217   : > { %vm944_vm14 = vcmp.lt.s32.totalorder %v937_v0, %v3618_v59  ;;  %vm946_vm8 = vcmp.lt.s32.totalorder %v939_v24, %v3624_v37  ;;  %vm948_vm11 = vcmp.lt.s32.totalorder %v941_v33, %v3630_v63  ;;  %vm950_vm0 = vcmp.lt.s32.totalorder %v943_v7, %v3636_v61  ;;  %v5115_v6 = vld [vmem:[#allocation57_spill] sm:$0xff] }
 0x218   : > { %v945_v16 = vsel %vm944_vm14, %v937_v0, %v3618_v59  ;;  %v947_v25 = vsel %vm946_vm8, %v939_v24, %v3624_v37  ;;  %v949_v4 = vsel %vm948_vm11, %v941_v33, %v3630_v63  ;;  %v951_v57 = vsel %vm950_vm0, %v943_v7, %v3636_v61  ;;  %v5117_v0 = vld [vmem:[#allocation81_spill] sm:$0xff]  ;;  %v5118_v7 = vld [vmem:[#allocation55_spill] sm:$0xff] }
 0x219   : > { %vm952_vm1 = vcmp.lt.s32.totalorder %v945_v16, %v3642_v42  ;;  %vm954_vm2 = vcmp.lt.s32.totalorder %v947_v25, %v3648_v39  ;;  %vm956_vm3 = vcmp.lt.s32.totalorder %v949_v4, %v3654_v43  ;;  %vm958_vm4 = vcmp.lt.s32.totalorder %v951_v57, %v3660_v48 }
 0x21a   : > { %v953_v51 = vsel %vm952_vm1, %v945_v16, %v3642_v42  ;;  %v955_v58 = vsel %vm954_vm2, %v947_v25, %v3648_v39  ;;  %v957_v34 = vsel %vm956_vm3, %v949_v4, %v3654_v43  ;;  %v959_v49 = vsel %vm958_vm4, %v951_v57, %v3660_v48  ;;  %v5119_v16 = vld [vmem:[#allocation53_spill] sm:$0xff] }
 0x21b   : > { %vm960_vm9 = vcmp.lt.s32.totalorder %v953_v51, %v3666_v53  ;;  %vm962_vm10 = vcmp.lt.s32.totalorder %v955_v58, %v3672_v46  ;;  %vm964_vm12 = vcmp.lt.s32.totalorder %v957_v34, %v3678_v60  ;;  %vm966_vm15 = vcmp.lt.s32.totalorder %v959_v49, %v3684_v1 }
 0x21c   : > { %v961_v2 = vsel %vm960_vm9, %v953_v51, %v3666_v53  ;;  %v963_v19 = vsel %vm962_vm10, %v955_v58, %v3672_v46  ;;  %v965_v30 = vsel %vm964_vm12, %v957_v34, %v3678_v60  ;;  %v967_v40 = vsel %vm966_vm15, %v959_v49, %v3684_v1  ;;  %v5120_v51 = vld [vmem:[#allocation56_spill] sm:$0xff] }
 0x21d   : > { %vm968_vm13 = vcmp.lt.s32.totalorder %v961_v2, %v3690_v8  ;;  %vm970_vm5 = vcmp.lt.s32.totalorder %v963_v19, %v3696_v10  ;;  %vm972_vm6 = vcmp.lt.s32.totalorder %v965_v30, %v3702_v18  ;;  %vm974_vm7 = vcmp.lt.s32.totalorder %v967_v40, %v3708_v21  ;;  %v5121_v49 = vld [vmem:[#allocation68_spill] sm:$0xff] }
 0x21e   : > { %v969_v47 = vsel %vm968_vm13, %v961_v2, %v3690_v8  ;;  %v971_v55 = vsel %vm970_vm5, %v963_v19, %v3696_v10  ;;  %v973_v53 = vsel %vm972_vm6, %v965_v30, %v3702_v18  ;;  %v975_v46 = vsel %vm974_vm7, %v967_v40, %v3708_v21  ;;  %v5101_v8 = vld [vmem:[#allocation71_spill] sm:$0xff]  ;;  %v5105_v18 = vld [vmem:[#allocation77_spill] sm:$0xff]  ;;  %v5123_v19 = vld [vmem:[#allocation54_spill] sm:$0xff] }
 0x21f   : > { %vm976_vm14 = vcmp.lt.s32.totalorder %v969_v47, %v3714_v31  ;;  %vm978_vm8 = vcmp.lt.s32.totalorder %v971_v55, %v3720_v9  ;;  %vm980_vm11 = vcmp.lt.s32.totalorder %v973_v53, %v3726_v12  ;;  %vm982_vm0 = vcmp.lt.s32.totalorder %v975_v46, %v3732_v17  ;;  %v5122_v2 = vld [vmem:[#allocation83_spill] sm:$0xff]  ;;  %v5124_v30 = vld [vmem:[#allocation88_spill] sm:$0xff] }
 0x220   : > { %v977_v3 = vsel %vm976_vm14, %v969_v47, %v3714_v31  ;;  %v979_v44 = vsel %vm978_vm8, %v971_v55, %v3720_v9  ;;  %v981_v13 = vsel %vm980_vm11, %v973_v53, %v3726_v12  ;;  %v983_v62 = vsel %vm982_vm0, %v975_v46, %v3732_v17  ;;  %v5102_v31 = vld [vmem:[#allocation64_spill] sm:$0xff]  ;;  %v5103_v9 = vld [vmem:[#allocation69_spill] sm:$0xff]  ;;  %v5125_v47 = vld [vmem:[#allocation86_spill] sm:$0xff] }
 0x221   : > { %vm984_vm1 = vcmp.lt.s32.totalorder %v977_v3, %v979_v44  ;;  %vm986_vm2 = vcmp.lt.s32.totalorder %v981_v13, %v983_v62  ;;  %v4920_v17 = vmov 1.0   ;;  %v2619_v56 = vmov 0.0   ;;  %v5104_v12 = vld [vmem:[#allocation45_spill] sm:$0xff]  ;;  %v5126_v55 = vld [vmem:[#allocation52_spill] sm:$0xff]  ;;  %v5127_v53 = vld [vmem:[#allocation90_spill] sm:$0xff] }
 0x222   : > { %v985_v23 = vsel %vm984_vm1, %v977_v3, %v979_v44  ;;  %v987_v59 = vsel %vm986_vm2, %v981_v13, %v983_v62  ;;  %v5128_v3 = vld [vmem:[#allocation72_spill] sm:$0xff]  ;;  %v5129_v44 = vld [vmem:[#allocation50_spill] sm:$0xff]  ;;  %v5130_v62 = vld [vmem:[#allocation91_spill] sm:$0xff] }
 0x223   : > { %vm988_vm3 = vcmp.lt.s32.totalorder %v985_v23, %v987_v59 }
 0x224   : > { %v989_v37 = vsel %vm988_vm3, %v985_v23, %v987_v59  ;;  %v5131_v23 = vld [vmem:[#allocation58_spill] sm:$0xff] }
 0x225   : > { %v990_v63 = vrot.slane %v989_v37, 4  ;;  %v5132_v59 = vld [vmem:[#allocation82_spill] sm:$0xff] }
 0x227   : > { %vm991_vm4 = vcmp.lt.s32.totalorder %v989_v37, %v990_v63 }
 0x228   : > { %v992_v61 = vsel %vm991_vm4, %v989_v37, %v990_v63  ;;  %v5133_v37 = vld [vmem:[#allocation48_spill] sm:$0xff] }
 0x229   : > { %v993_v42 = vrot.slane %v992_v61, 2  ;;  %v5134_v63 = vld [vmem:[#allocation80_spill] sm:$0xff] }
 0x22b   : > { %vm994_vm9 = vcmp.lt.s32.totalorder %v992_v61, %v993_v42 }
 0x22c   : > { %v995_v39 = vsel %vm994_vm9, %v992_v61, %v993_v42  ;;  %v5135_v42 = vld [vmem:[#allocation60_spill] sm:$0xff] }
 0x22d   : > { %v996_v43 = vrot.slane %v995_v39, 1 }
 0x22f   : > { %vm997_vm10 = vcmp.lt.s32.totalorder %v995_v39, %v996_v43 }
 0x230   : > { %v3790_v48 = vsel %vm997_vm10, %v995_v39, %v996_v43  ;;  %v5136_v39 = vld [vmem:[#allocation85_spill] sm:$0xff]  ;;  %v5137_v43 = vld [vmem:[#allocation46_spill] sm:$0xff] }
 0x231   : > { %vm4906_vm12 = vcmp.eq.s32.totalorder %v5047_v5, %v3790_v48  ;;  %vm4900_vm15 = vcmp.eq.s32.totalorder %v5076_v50, %v3790_v48  ;;  %vm4904_vm13 = vcmp.eq.s32.totalorder %v3243_v32, %v3790_v48  ;;  %vm4899_vm5 = vcmp.eq.s32.totalorder %v5049_v35, %v3790_v48 }
 0x232   : > { %1878 = vmatpush.msk.msrb.mxu1 %vm4906_vm12, %v4920_v17  ;;  %1954 = vmatpush.msk.msra.mxu2 %vm4906_vm12, %v4920_v17  ;;  %v1862_v60 = vsel %vm4900_vm15, 1.0, %v2619_v56  ;;  %v1830_v1 = vsel %vm4904_vm13, 1.0, %v2619_v56  ;;  %vm4909_vm6 = vcmp.eq.s32.totalorder %v5101_v8, %v3790_v48  ;;  %v1846_v10 = vsel %vm4899_vm5, 1.0, %v2619_v56 }
 0x233   : > { %1955 = vmatpush.msk.msra.mxu3 %vm4906_vm12, %v4920_v17  ;;  %1466 = vxpose.xlu1.b32.start [1/16] %v1862_v60, 128  ;;  %v2173_v21 = vpack.i.bf16 %v1846_v10, %v1830_v1  ;;  %vm4902_vm7 = vcmp.eq.s32.totalorder %v5102_v31, %v3790_v48  ;;  %vm4911_vm14 = vcmp.eq.s32.totalorder %v5103_v9, %v3790_v48  ;;  %v5138_v60 = vld [vmem:[#allocation78_spill] sm:$0xff] }
 0x234   : > { %1879 = vmatpush.msk.msrb.mxu1 %vm4909_vm6, %v4920_v17  ;;  %1956 = vmatpush.msk.msra.mxu2 %vm4909_vm6, %v4920_v17  ;;  %vm4905_vm8 = vcmp.eq.s32.totalorder %v5104_v12, %v3790_v48  ;;  %vm4901_vm11 = vcmp.eq.s32.totalorder %v5105_v18, %v3790_v48  ;;  %vm4914_vm0 = vcmp.eq.s32.totalorder %v5106_v38, %v3790_v48  ;;  %v1863_v29 = vsel %vm4902_vm7, 1.0, %v2619_v56 }
 0x235   : > { %1957 = vmatpush.msk.msra.mxu3 %vm4909_vm6, %v4920_v17  ;;  %2174 = vxpose.xlu0.b32.start [1/16] %v2173_v21, 128  ;;  %vm4915_vm1 = vcmp.eq.s32.totalorder %v5107_v52, %v3790_v48  ;;  %vm1009_vm2 = vcmp.eq.s32.totalorder %v5108_v11, %v3790_v48  ;;  %vm4908_vm3 = vcmp.eq.s32.totalorder %v5109_v45, %v3790_v48  ;;  %v1831_v26 = vsel %vm4905_vm8, 1.0, %v2619_v56  ;;  %v5139_v21 = vld [vmem:[#allocation89_spill] sm:$0xff] }
 0x236   : > { %1880 = vmatpush.msk.msrb.mxu1 %vm4911_vm14, %v4920_v17  ;;  %1958 = vmatpush.msk.msra.mxu2 %vm4911_vm14, %v4920_v17  ;;  %vm4903_vm4 = vcmp.eq.s32.totalorder %v5110_v14, %v3790_v48  ;;  %v1847_v27 = vsel %vm4901_vm11, 1.0, %v2619_v56  ;;  %vm1008_vm9 = vcmp.eq.s32.totalorder %v5111_v54, %v3790_v48  ;;  %vm1007_vm10 = vcmp.eq.s32.totalorder %v5112_v20, %v3790_v48 }
 0x237   : > { %1959 = vmatpush.msk.msra.mxu3 %vm4911_vm14, %v4920_v17  ;;  %v3900_v36 = vsel %vm4908_vm3, 1.0, %v2619_v56  ;;  %v3906_v28 = vsel %vm4903_vm4, 1.0, %v2619_v56  ;;  %vm4916_vm5 = vcmp.eq.s32.totalorder %v5113_v22, %v3790_v48  ;;  %vm4913_vm15 = vcmp.eq.s32.totalorder %v5114_v41, %v3790_v48 }
 0x238   : > { %1881 = vmatpush.msk.msrb.mxu1 %vm4914_vm0, %v4920_v17  ;;  %1960 = vmatpush.msk.msra.mxu2 %vm4914_vm0, %v4920_v17  ;;  %vm1006_vm11 = vcmp.eq.s32.totalorder %v5115_v6, %v3790_v48  ;;  %vm4910_vm7 = vcmp.eq.s32.totalorder %v5116_v15, %v3790_v48  ;;  %vm4907_vm4 = vcmp.eq.s32.totalorder %v5117_v0, %v3790_v48  ;;  %v3926_v24 = vsel %vm4913_vm15, 1.0, %v2619_v56 }
 0x239   : > { %1961 = vmatpush.msk.msra.mxu3 %vm4914_vm0, %v4920_v17  ;;  %v2175_v33 = vpack.i.bf16 %v1847_v27, %v1831_v26  ;;  %vm1005_vm13 = vcmp.eq.s32.totalorder %v5118_v7, %v3790_v48  ;;  %vm1004_vm8 = vcmp.eq.s32.totalorder %v5119_v16, %v3790_v48  ;;  %v3944_v25 = vsel %vm4907_vm4, 1.0, %v2619_v56  ;;  %v5141_v26 = vld [vmem:[#allocation74_spill] sm:$0xff] }
 0x23a   : > { %1882 = vmatpush.msk.msrb.mxu1 %vm4915_vm1, %v4920_v17  ;;  %1962 = vmatpush.msk.msra.mxu2 %vm4915_vm1, %v4920_v17  ;;  %v2177_v4 = vpack.i.bf16 %v3906_v28, %v3900_v36  ;;  %v3960_v58 = vsel %vm4916_vm5, 1.0, %v2619_v56  ;;  %v1864_v34 = vsel %vm4910_vm7, 1.0, %v2619_v56  ;;  %vm1034_vm4 = vcmp.eq.s32.totalorder %v5121_v49, %v3790_v48  ;;  %v5142_v36 = vld [vmem:[#allocation84_spill] sm:$0xff]  ;;  %v1161_v49 = vld [vmem:[%s2962_s25 + $0x90] sm:$0xff] }
 0x23b   : > { %1963 = vmatpush.msk.msra.mxu3 %vm4915_vm1, %v4920_v17  ;;  %1467 = vxpose.xlu1.b32.cont [2/16] %v1863_v29, 128  ;;  %vm4912_vm3 = vcmp.eq.s32.totalorder %v5122_v2, %v3790_v48  ;;  %v4016_v13 = vsel %vm1004_vm8, 1.0, %v2619_v56  ;;  %vm1041_vm6 = vcmp.eq.s32.totalorder %v5132_v59, %v3790_v48  ;;  %vm1024_vm0 = vcmp.eq.s32.totalorder %v5133_v37, %v3790_v48  ;;  %v5140_v29 = vld [vmem:[#allocation76_spill] sm:$0xff] }
 0x23c   : > { %1883 = vmatpush.msk.msrb.mxu1 %vm1009_vm2, %v4920_v17  ;;  %1964 = vmatpush.msk.msra.mxu2 %vm1009_vm2, %v4920_v17  ;;  %v3990_v40 = vsel %vm4912_vm3, 1.0, %v2619_v56  ;;  %vm1040_vm7 = vcmp.eq.s32.totalorder %v5134_v63, %v3790_v48  ;;  %v4036_v61 = vsel %vm1005_vm13, 1.0, %v2619_v56  ;;  %vm4917_vm15 = vcmp.eq.s32.totalorder %v5136_v39, %v3790_v48  ;;  %v1188_v59 = vld [vmem:[%s2962_s25 + $0x168] sm:$0xff]  ;;  %v1167_v63 = vld [vmem:[%s2962_s25 + $0xc0] sm:$0xff] }
 0x23d   : > { %1965 = vmatpush.msk.msra.mxu3 %vm1009_vm2, %v4920_v17  ;;  %2176 = vxpose.xlu0.b32.cont [2/16] %v2175_v33, 128  ;;  %vm1023_vm14 = vcmp.eq.s32.totalorder %v5137_v43, %v3790_v48  ;;  %vm1039_vm1 = vcmp.eq.s32.totalorder %v5138_v60, %v3790_v48  ;;  %v4058_v1 = vsel %vm1006_vm11, 1.0, %v2619_v56  ;;  %v4068_v10 = vsel %vm4917_vm15, 1.0, %v2619_v56  ;;  %v5143_v33 = vld [vmem:[#allocation87_spill] sm:$0xff]  ;;  %v1148_v43 = vld [vmem:[%s2962_s25 + $0x28] sm:$0xff] }
 0x23e   : > { %1884 = vmatpush.msk.msrb.mxu1 %vm1008_vm9, %v4920_v17  ;;  %1966 = vmatpush.msk.msra.mxu2 %vm1008_vm9, %v4920_v17  ;;  %vm1022_vm3 = vcmp.eq.s32.totalorder %v5139_v21, %v3790_v48  ;;  %vm1038_vm5 = vcmp.eq.s32.totalorder %v5140_v29, %v3790_v48  ;;  %v1865_v27 = vsel %vm1034_vm4, 1.0, %v2619_v56  ;;  %vm1042_vm15 = vcmp.eq.s32.totalorder %v5142_v36, %v3790_v48  ;;  %v1151_v21 = vld [vmem:[%s2962_s25 + $0x40] sm:$0xff]  ;;  %v1150_v36 = vld [vmem:[%s2962_s25 + $0x38] sm:$0xff] }
 0x23f   : > { %1967 = vmatpush.msk.msra.mxu3 %vm1008_vm9, %v4920_v17  ;;  %vm1021_vm12 = vcmp.eq.s32.totalorder %v5143_v33, %v3790_v48  ;;  %v4108_v28 = vsel %vm1022_vm3, 1.0, %v2619_v56  ;;  %v4120_v46 = vsel %vm1007_vm10, 1.0, %v2619_v56  ;;  %v4138_v20 = vsel %vm1023_vm14, 1.0, %v2619_v56  ;;  %v1153_v33 = vld [vmem:[%s2962_s25 + $0x50] sm:$0xff] }
 0x240   : > { %1885 = vmatpush.msk.msrb.mxu1 %vm1007_vm10, %v4920_v17  ;;  %1968 = vmatpush.msk.msra.mxu2 %vm1007_vm10, %v4920_v17  ;;  %v4102_v6 = vsel %vm1021_vm12, 1.0, %v2619_v56  ;;  %v4144_v35 = vsel %vm1040_vm7, 1.0, %v2619_v56  ;;  %v4162_v57 = vsel %vm1024_vm0, 1.0, %v2619_v56  ;;  %v4184_v7 = vsel %vm1009_vm2, 1.0, %v2619_v56 }
 0x241   : > { %1969 = vmatpush.msk.msra.mxu3 %vm1007_vm10, %v4920_v17  ;;  %v4196_v16 = vsel %vm1042_vm15, 1.0, %v2619_v56  ;;  %vm5152_vm2 = vcmp.eq.s32.totalorder %v5126_v55, %v3790_v48 }
 0x242   : > { %1886 = vmatpush.msk.msrb.mxu1 %vm1006_vm11, %v4920_v17  ;;  %1970 = vmatpush.msk.msra.mxu2 %vm1006_vm11, %v4920_v17  ;;  %5148 = vst [vmem:[#allocation44_spill] sm:$0xff] %v4196_v16  ;;  %v5155_v16 = vmov 1.0  }
 0x243   : > { %1971 = vmatpush.msk.msra.mxu3 %vm1006_vm11, %v4920_v17  ;;  %1468 = vxpose.xlu1.b32.cont [3/16] %v1864_v34, 128  ;;  %v4114_v34 = vsel %vm1039_vm1, 1.0, %v2619_v56  ;;  %vm5150_vm11 = vcmp.eq.s32.totalorder %v5107_v52, %v3790_v48 }
 0x244   : > { %1887 = vmatpush.msk.msrb.mxu1 %vm1005_vm13, %v4920_v17  ;;  %5144 = vst [vmem:[#allocation73_spill] sm:$0xff] %v4114_v34  ;;  %1972 = vmatpush.msk.msra.mxu2 %vm1005_vm13, %v4920_v17  ;;  %v4156_v34 = vsel %vm1008_vm9, 1.0, %v2619_v56  ;;  %v4208_v54 = vsel %vm5150_vm11, 1.0, %v2619_v56  ;;  %vm5153_vm9 = vcmp.eq.s32.totalorder %v5125_v47, %v3790_v48  ;;  %vm5159_vm11 = vcmp.eq.s32.totalorder %v5123_v19, %v3790_v48 }
 0x245   : > { %1973 = vmatpush.msk.msra.mxu3 %vm1005_vm13, %v4920_v17  ;;  %2178 = vxpose.xlu0.b32.cont [3/16] %v2177_v4, 128  ;;  %5145 = vst [vmem:[#allocation62_spill] sm:$0xff] %v4156_v34  ;;  %v4168_v4 = vsel %vm1041_vm6, 1.0, %v2619_v56  ;;  %vm5147_vm13 = vcmp.eq.s32.totalorder %v5129_v44, %v3790_v48  ;;  %v4214_v34 = vsel %vm5152_vm2, 1.0, %v2619_v56  ;;  %vm5160_vm2 = vcmp.eq.s32.totalorder %v5124_v30, %v3790_v48 }
 0x246   : > { %1888 = vmatpush.msk.msrb.mxu1 %vm1004_vm8, %v4920_v17  ;;  %5146 = vst [vmem:[#allocation43_spill] sm:$0xff] %v4168_v4  ;;  %1974 = vmatpush.msk.msra.mxu2 %vm1004_vm8, %v4920_v17  ;;  %v4190_v4 = vsel %vm5147_vm13, 1.0, %v2619_v56 }
 0x247   : > { %1975 = vmatpush.msk.msra.mxu3 %vm1004_vm8, %v4920_v17  ;;  %vm5149_vm8 = vcmp.eq.s32.totalorder %v5113_v22, %v3790_v48  ;;  %5151 = vst [vmem:[#allocation71_spill] sm:$0xff] %v4208_v54  ;;  %v4248_v22 = vsel %vm5160_vm2, 1.0, %v2619_v56  ;;  %v5219_v37 = vpack.i.bf16 %v4190_v4, %v4184_v7  ;;  %v1160_v7 = vld [vmem:[%s2962_s25 + $0x88] sm:$0xff]  ;;  %v1159_v4 = vld [vmem:[%s2962_s25 + $0x80] sm:$0xff] }
 0x248   : > { %1889 = vmatpush.msk.msrb.mxu1 %vm5149_vm8, %v4920_v17  ;;  %v4220_v17 = vsel %vm5153_vm9, 1.0, %v2619_v56  ;;  %vm5156_vm10 = vmmov %vm5149_vm8  ;;  %5161 = vst [vmem:[#allocation69_spill] sm:$0xff] %v4248_v22  ;;  %vm5162_vm9 = vcmp.eq.s32.totalorder %v5114_v41, %v3790_v48 }
 0x249   : > { %5154 = vst [vmem:[#allocation64_spill] sm:$0xff] %v4220_v17  ;;  %1976 = vmatpush.msk.msra.mxu2 %vm5156_vm10, %v5155_v16  ;;  %vm5157_vm13 = vmmov %vm5149_vm8  ;;  %vm5158_vm8 = vcmp.eq.s32.totalorder %v5106_v38, %v3790_v48  ;;  %v4242_v17 = vsel %vm5159_vm11, 1.0, %v2619_v56  ;;  %vm5163_vm10 = vcmp.eq.s32.totalorder %v5103_v9, %v3790_v48 }
 0x24a   : > { %1977 = vmatpush.msk.msra.mxu3 %vm5157_vm13, %v5155_v16  ;;  %v4236_v11 = vsel %vm5158_vm8, 1.0, %v2619_v56  ;;  %1890 = vmatpush.msk.msrb.mxu1 %vm5162_vm9, %v5155_v16  ;;  %v4260_v52 = vsel %vm5163_vm10, 1.0, %v2619_v56  ;;  %vm5164_vm13 = vcmp.eq.s32.totalorder %v5120_v51, %v3790_v48  ;;  %vm5165_vm8 = vcmp.eq.s32.totalorder %v5127_v53, %v3790_v48  ;;  %vm5167_vm11 = vmmov %vm5162_vm9 }
 0x24b   : > { %v4266_v54 = vsel %vm5164_vm13, 1.0, %v2619_v56  ;;  %v4272_v22 = vsel %vm5165_vm8, 1.0, %v2619_v56  ;;  %1978 = vmatpush.msk.msra.mxu2 %vm5167_vm11, %v5155_v16  ;;  %vm5168_vm2 = vmmov %vm5162_vm9  ;;  %vm5169_vm9 = vcmp.eq.s32.totalorder %v5101_v8, %v3790_v48  ;;  %vm5170_vm10 = vcmp.eq.s32.totalorder %v5131_v23, %v3790_v48  ;;  %1469 = vxpose.xlu1.b32.cont [4/16] %v1865_v27, 128 }
 0x24c   : > { %5166 = vst [vmem:[#allocation45_spill] sm:$0xff] %v4272_v22  ;;  %1979 = vmatpush.msk.msra.mxu3 %vm5168_vm2, %v5155_v16  ;;  %v4288_v38 = vsel %vm5169_vm9, 1.0, %v2619_v56  ;;  %v4294_v22 = vsel %vm5170_vm10, 1.0, %v2619_v56  ;;  %vm5171_vm13 = vcmp.eq.s32.totalorder %v5130_v62, %v3790_v48  ;;  %vm5173_vm8 = vcmp.eq.s32.totalorder %v5109_v45, %v3790_v48  ;;  %v1146_v45 = vld [vmem:[%s2962_s25 + $0x18] sm:$0xff] }
 0x24d   : > { %v4300_v41 = vsel %vm5171_vm13, 1.0, %v2619_v56  ;;  %1891 = vmatpush.msk.msrb.mxu1 %vm5173_vm8, %v5155_v16  ;;  %v2201_v8 = vpack.i.bf16 %v4294_v22, %v4288_v38  ;;  %vm5174_vm11 = vcmp.eq.s32.totalorder %v5047_v5, %v3790_v48  ;;  %vm5175_vm2 = vcmp.eq.s32.totalorder %v5135_v42, %v3790_v48  ;;  %vm5176_vm9 = vmmov %vm5173_vm8  ;;  %v1169_v22 = vld [vmem:[%s2962_s25 + $0xd0] sm:$0xff]  ;;  %v1168_v38 = vld [vmem:[%s2962_s25 + $0xc8] sm:$0xff] }
 0x24e   : > { %5172 = vst [vmem:[#allocation77_spill] sm:$0xff] %v4300_v41  ;;  %v4312_v9 = vsel %vm5174_vm11, 1.0, %v2619_v56  ;;  %v4318_v41 = vsel %vm5175_vm2, 1.0, %v2619_v56  ;;  %1980 = vmatpush.msk.msra.mxu2 %vm5176_vm9, %v5155_v16  ;;  %vm5177_vm10 = vmmov %vm5173_vm8  ;;  %v5178_v27 = vpack.i.bf16 %v3944_v25, %v3926_v24  ;;  %vm5179_vm13 = vcmp.eq.s32.totalorder %v5104_v12, %v3790_v48  ;;  %v5183_v24 = vld [vmem:[#allocation70_spill] sm:$0xff] }
 0x24f   : > { %1981 = vmatpush.msk.msra.mxu3 %vm5177_vm10, %v5155_v16  ;;  %v2203_v5 = vpack.i.bf16 %v4318_v41, %v4312_v9  ;;  %1892 = vmatpush.msk.msrb.mxu1 %vm5179_vm13, %v5155_v16  ;;  %vm5180_vm8 = vmmov %vm5179_vm13  ;;  %vm5182_vm2 = vcmp.eq.s32.totalorder %v3243_v32, %v3790_v48  ;;  %vm1035_vm9 = vcmp.eq.s32.totalorder %v5183_v24, %v3790_v48  ;;  %v1170_v25 = vld [vmem:[%s2962_s25 + $0xd8] sm:$0xff]  ;;  %v5225_v29 = vld [vmem:[#allocation69_spill] sm:$0xff] }
 0x250   : > { %2180 = vxpose.xlu0.b32.cont [4/16] %v5178_v27, 128  ;;  %1982 = vmatpush.msk.msra.mxu2 %vm5180_vm8, %v5155_v16  ;;  %vm5181_vm11 = vmmov %vm5180_vm8  ;;  %vm5186_vm8 = vcmp.eq.s32.totalorder %v5130_v62, %v3790_v48  ;;  %v1866_v12 = vsel %vm1035_vm9, 1.0, %v2619_v56  ;;  %v5191_v32 = vpack.i.bf16 %v3990_v40, %v3960_v58  ;;  %v1173_v62 = vld [vmem:[%s2962_s25 + $0xf0] sm:$0xff]  ;;  %v5198_v58 = vpack.i.bf16 %v4068_v10, %v4016_v13  ;;  %v5223_v60 = vld [vmem:[#allocation64_spill] sm:$0xff] }
 0x251   : > { %1983 = vmatpush.msk.msra.mxu3 %vm5181_vm11, %v5155_v16  ;;  %1893 = vmatpush.msk.msrb.mxu1 %vm5182_vm2, %v5155_v16  ;;  %vm5184_vm10 = vmmov %vm5182_vm2  ;;  %vm5187_vm11 = vcmp.eq.s32.totalorder %v5135_v42, %v3790_v48  ;;  %v1147_v10 = vld [vmem:[%s2962_s25 + $0x20] sm:$0xff]  ;;  %v1172_v9 = vld [vmem:[%s2962_s25 + $0xe8] sm:$0xff] }
 0x252   : > { %1984 = vmatpush.msk.msra.mxu2 %vm5184_vm10, %v5155_v16  ;;  %vm5185_vm13 = vmmov %vm5182_vm2  ;;  %vm5188_vm2 = vcmp.eq.s32.totalorder %v5127_v53, %v3790_v48  ;;  %vm5189_vm10 = vcmp.eq.s32.totalorder %v5131_v23, %v3790_v48  ;;  %v1149_v53 = vld [vmem:[%s2962_s25 + $0x30] sm:$0xff]  ;;  %v1164_v23 = vld [vmem:[%s2962_s25 + $0xa8] sm:$0xff] }
 0x253   : > { %1985 = vmatpush.msk.msra.mxu3 %vm5185_vm13, %v5155_v16  ;;  %1210 = vmatmul.f32.vlgmr.msra.gmra.mxu2 %v1146_v45  ;;  %vm5190_vm13 = vcmp.eq.s32.totalorder %v5124_v30, %v3790_v48  ;;  %v1176_v30 = vld [vmem:[%s2962_s25 + $0x108] sm:$0xff]  ;;  %v1175_v27 = vld [vmem:[%s2962_s25 + $0x100] sm:$0xff] }
 0x254   : > { %1894 = vmatpush.msk.msrb.mxu2 %vm5187_vm11, %v5155_v16  ;;  %1234 = vmatmul.f32.vlgmr.msra.gmra.mxu3 %v1170_v25  ;;  %vm5193_vm11 = vcmp.eq.s32.totalorder %v5125_v47, %v3790_v48  ;;  %v5202_v47 = vpack.i.bf16 %v4102_v6, %v4036_v61  ;;  %v1145_v61 = vld [vmem:[%s2962_s25 + $0x10] sm:$0xff]  ;;  %v1174_v25 = vld [vmem:[%s2962_s25 + $0xf8] sm:$0xff] }
 0x255   : > { %1910 = vmatpush.msk.msrb.mxu3 %vm5186_vm8, %v5155_v16  ;;  %1470 = vxpose.xlu1.b32.cont [5/16] %v1866_v12, 128  ;;  %vm5192_vm8 = vcmp.eq.s32.totalorder %v5120_v51, %v3790_v48  ;;  %v1157_v6 = vld [vmem:[%s2962_s25 + $0x70] sm:$0xff]  ;;  %v1178_v12 = vld [vmem:[%s2962_s25 + $0x118] sm:$0xff] }
 0x256   : > { %1895 = vmatpush.msk.msrb.mxu2 %vm5189_vm10, %v5155_v16  ;;  %vm5195_vm10 = vcmp.eq.s32.totalorder %v5126_v55, %v3790_v48  ;;  %v1155_v55 = vld [vmem:[%s2962_s25 + $0x60] sm:$0xff] }
 0x257   : > { %1911 = vmatpush.msk.msrb.mxu3 %vm5188_vm2, %v5155_v16  ;;  %vm5194_vm2 = vcmp.eq.s32.totalorder %v5123_v19, %v3790_v48  ;;  %v1152_v19 = vld [vmem:[%s2962_s25 + $0x48] sm:$0xff] }
 0x258   : > { %2182 = vxpose.xlu0.b32.cont [5/16] %v5191_v32, 128  ;;  %1896 = vmatpush.msk.msrb.mxu2 %vm5192_vm8, %v5155_v16  ;;  %vm5211_vm8 = vcmp.eq.s32.totalorder %v5076_v50, %v3790_v48  ;;  %v1143_v50 = vld [vmem:[%s2962_s25] sm:$0xff] }
 0x259   : > { %1912 = vmatpush.msk.msrb.mxu3 %vm5190_vm13, %v5155_v16  ;;  %vm5196_vm13 = vcmp.eq.s32.totalorder %v5128_v3, %v3790_v48  ;;  %v1869_v3 = vsel %vm1038_vm5, 1.0, %v2619_v56  ;;  %1207 = vmatmul.f32.vlgmr.msrb.gmra.mxu1 %v1143_v50 }
 0x25a   : > { %1897 = vmatpush.msk.msrb.mxu2 %vm5194_vm2, %v5155_v16  ;;  %v1867_v51 = vsel %vm5196_vm13, 1.0, %v2619_v56 }
 0x25b   : > { %1913 = vmatpush.msk.msrb.mxu3 %vm5193_vm11, %v5155_v16  ;;  %1213 = vmatmul.f32.gmra.mxu2 %v1149_v53 }
 0x25c   : > { %1898 = vmatpush.msk.msrb.mxu2 %vm5195_vm10, %v5155_v16  ;;  %1237 = vmatmul.f32.gmra.mxu3 %v1173_v62  ;;  %v1177_v62 = vld [vmem:[%s2962_s25 + $0x110] sm:$0xff] }
 0x25d   : > { %1914 = vmatpush.msk.msrb.mxu3 %vm1042_vm15, %v5155_v16  ;;  %1471 = vxpose.xlu1.b32.cont [6/16] %v1867_v51, 128  ;;  %vm5197_vm15 = vcmp.eq.s32.totalorder %v5129_v44, %v3790_v48  ;;  %v1179_v44 = vld [vmem:[%s2962_s25 + $0x120] sm:$0xff]  ;;  %v1181_v51 = vld [vmem:[%s2962_s25 + $0x130] sm:$0xff] }
 0x25e   : > { %1899 = vmatpush.msk.msrb.mxu2 %vm5197_vm15, %v5155_v16 }
 0x25f   : > { %1915 = vmatpush.msk.msrb.mxu3 %vm1041_vm6, %v5155_v16  ;;  %vm5199_vm6 = vcmp.eq.s32.totalorder %v5141_v26, %v3790_v48  ;;  %v5226_v26 = vpack.i.bf16 %v4266_v54, %v4260_v52  ;;  %v1163_v54 = vld [vmem:[%s2962_s25 + $0xa0] sm:$0xff]  ;;  %v1165_v52 = vld [vmem:[%s2962_s25 + $0xb0] sm:$0xff] }
 0x260   : > { %2184 = vxpose.xlu0.b32.cont [6/16] %v5198_v58, 128  ;;  %1900 = vmatpush.msk.msrb.mxu2 %vm1024_vm0, %v5155_v16  ;;  %v1868_v40 = vsel %vm5199_vm6, 1.0, %v2619_v56  ;;  %vm5203_vm0 = vcmp.eq.s32.totalorder %v5136_v39, %v3790_v48  ;;  %v5209_v56 = vpack.i.bf16 %v4108_v28, %v4058_v1  ;;  %v1144_v39 = vld [vmem:[%s2962_s25 + $0x8] sm:$0xff]  ;;  %v5224_v1 = vpack.i.bf16 %v4242_v17, %v4236_v11  ;;  %v1154_v28 = vld [vmem:[%s2962_s25 + $0x58] sm:$0xff]  ;;  %v5227_v17 = vld [vmem:[#allocation45_spill] sm:$0xff] }
 0x261   : > { %1916 = vmatpush.msk.msrb.mxu3 %vm1040_vm7, %v5155_v16  ;;  %vm5200_vm7 = vmmov %vm5199_vm6  ;;  %v1166_v11 = vld [vmem:[%s2962_s25 + $0xb8] sm:$0xff] }
 0x262   : > { %1901 = vmatpush.msk.msrb.mxu2 %vm1023_vm14, %v5155_v16  ;;  %vm5201_vm14 = vmmov %vm5196_vm13 }
 0x263   : > { %1917 = vmatpush.msk.msrb.mxu3 %vm1039_vm1, %v5155_v16  ;;  %1216 = vmatmul.f32.gmra.mxu2 %v1152_v19  ;;  %vm5205_vm1 = vcmp.eq.s32.totalorder %v5117_v0, %v3790_v48  ;;  %v5214_v0 = vld [vmem:[#allocation73_spill] sm:$0xff] }
 0x264   : > { %1902 = vmatpush.msk.msrb.mxu2 %vm1022_vm3, %v5155_v16  ;;  %1240 = vmatmul.f32.gmra.mxu3 %v1176_v30  ;;  %vm5206_vm3 = vcmp.eq.s32.totalorder %v5116_v15, %v3790_v48  ;;  %v1158_v15 = vld [vmem:[%s2962_s25 + $0x78] sm:$0xff]  ;;  %v1180_v30 = vld [vmem:[%s2962_s25 + $0x128] sm:$0xff] }
 0x265   : > { %1918 = vmatpush.msk.msrb.mxu3 %vm1038_vm5, %v5155_v16  ;;  %1472 = vxpose.xlu1.b32.cont [7/16] %v1868_v40, 128  ;;  %vm5210_vm5 = vcmp.eq.s32.totalorder %v5105_v18, %v3790_v48  ;;  %v5215_v18 = vpack.i.bf16 %v4138_v20, %v4120_v46  ;;  %v5218_v46 = vld [vmem:[#allocation43_spill] sm:$0xff]  ;;  %v1156_v20 = vld [vmem:[%s2962_s25 + $0x68] sm:$0xff] }
 0x266   : > { %1903 = vmatpush.msk.msrb.mxu2 %vm1021_vm12, %v5155_v16  ;;  %vm5204_vm12 = vcmp.eq.s32.totalorder %v5122_v2, %v3790_v48  ;;  %v1185_v2 = vld [vmem:[%s2962_s25 + $0x150] sm:$0xff]  ;;  %v1184_v40 = vld [vmem:[%s2962_s25 + $0x148] sm:$0xff] }
 0x267   : > { %1919 = vmatpush.msk.msrb.mxu3 %vm5200_vm7, %v5155_v16 }
 0x268   : > { %2186 = vxpose.xlu0.b32.cont [7/16] %v5202_v47, 128  ;;  %1904 = vmatpush.msk.msrb.mxu2 %vm5203_vm0, %v5155_v16 }
 0x269   : > { %1920 = vmatpush.msk.msrb.mxu3 %vm5201_vm14, %v5155_v16 }
 0x26a   : > { %1905 = vmatpush.msk.msrb.mxu2 %vm5204_vm12, %v5155_v16 }
 0x26b   : > { %1921 = vmatpush.msk.msrb.mxu3 %vm1035_vm9, %v5155_v16  ;;  %1219 = vmatmul.f32.gmra.mxu2 %v1155_v55  ;;  %vm5208_vm9 = vcmp.eq.s32.totalorder %v5102_v31, %v3790_v48  ;;  %v5212_v31 = vld [vmem:[#allocation75_spill] sm:$0xff] }
 0x26c   : > { %1906 = vmatpush.msk.msrb.mxu2 %vm5205_vm1, %v5155_v16  ;;  %1243 = vmatmul.f32.gmra.mxu3 %v1179_v44  ;;  %vm5213_vm11 = vcmp.eq.s32.totalorder %v5212_v31, %v3790_v48  ;;  %v1187_v31 = vld [vmem:[%s2962_s25 + $0x160] sm:$0xff] }
 0x26d   : > { %1922 = vmatpush.msk.msrb.mxu3 %vm1034_vm4, %v5155_v16  ;;  %1473 = vxpose.xlu1.b32.cont [8/16] %v1869_v3, 128  ;;  %vm5207_vm4 = vcmp.eq.s32.totalorder %v5110_v14, %v3790_v48  ;;  %v1182_v14 = vld [vmem:[%s2962_s25 + $0x138] sm:$0xff]  ;;  %v1183_v3 = vld [vmem:[%s2962_s25 + $0x140] sm:$0xff] }
 0x26e   : > { %1907 = vmatpush.msk.msrb.mxu2 %vm5207_vm4, %v5155_v16  ;;  %v5216_v48 = vld [vmem:[#allocation62_spill] sm:$0xff] }
 0x26f   : > { %1923 = vmatpush.msk.msrb.mxu3 %vm5206_vm3, %v5155_v16  ;;  %v5217_v13 = vpack.i.bf16 %v4162_v57, %v5216_v48  ;;  %v5221_v57 = vld [vmem:[#allocation71_spill] sm:$0xff]  ;;  %v1186_v48 = vld [vmem:[%s2962_s25 + $0x158] sm:$0xff] }
 0x270   : > { %2188 = vxpose.xlu0.b32.cont [8/16] %v5209_v56, 128  ;;  %1908 = vmatpush.msk.msrb.mxu2 %vm5210_vm5, %v5155_v16  ;;  %v5222_v42 = vpack.i.bf16 %v4214_v34, %v5221_v57  ;;  %v5228_v34 = vld [vmem:[#allocation77_spill] sm:$0xff] }
 0x271   : > { %1924 = vmatpush.msk.msrb.mxu3 %vm5208_vm9, %v5155_v16 }
 0x272   : > { %1909 = vmatpush.msk.msrb.mxu2 %vm5213_vm11, %v5155_v16 }
 0x273   : > { %1925 = vmatpush.msk.msrb.mxu3 %vm5211_vm8, %v5155_v16  ;;  %1222 = vmatmul.f32.gmra.mxu2 %v1158_v15  ;;  %v1162_v16 = vld [vmem:[%s2962_s25 + $0x98] sm:$0xff] }
 0x274   : > { %1246 = vmatmul.f32.gmra.mxu3 %v1182_v14 }
 0x275   : > { %1474 = vxpose.xlu1.b32.cont [9/16] %v5214_v0, 128 }
 0x278   : > { %2190 = vxpose.xlu0.b32.cont [9/16] %v5215_v18, 128 }
 0x27b   : > { %1225 = vmatmul.f32.gmra.mxu2 %v1161_v49 }
 0x27c   : > { %1249 = vmatmul.f32.gmra.mxu3 %v1185_v2 }
 0x27d   : > { %1475 = vxpose.xlu1.b32.cont [10/16] %v4144_v35, 128  ;;  %v5220_v35 = vld [vmem:[#allocation44_spill] sm:$0xff] }
 0x280   : > { %2192 = vxpose.xlu0.b32.cont [10/16] %v5217_v13, 128 }
 0x283   : > { %1228 = vmatmul.f32.gmra.mxu2 %v1164_v23 }
 0x284   : > { %1252 = vmatmul.f32.gmra.mxu3 %v1188_v59 }
 0x285   : > { %1476 = vxpose.xlu1.b32.cont [11/16] %v5218_v46, 128  ;;  %v1190_v46 = vld [vmem:[%s2962_s25 + $0x178] sm:$0xff] }
 0x288   : > { %2194 = vxpose.xlu0.b32.cont [11/16] %v5219_v37, 128 }
 0x28b   : > { %1231 = vmatmul.f32.gmra.mxu2 %v1167_v63 }
 0x28c   : > { %1337 = vmatmul.f32.vlgmr.msrb.gmra.mxu3 %v1145_v61 }
 0x28d   : > { %1477 = vxpose.xlu1.b32.cont [12/16] %v5220_v35, 128 }
 0x290   : > { %2196 = vxpose.xlu0.b32.cont [12/16] %v5222_v42, 128  ;;  %v1189_v42 = vld [vmem:[%s2962_s25 + $0x170] sm:$0xff] }
 0x293   : > { %1272 = vmatmul.f32.vlgmr.msrb.gmra.mxu2 %v1144_v39 }
 0x294   : > { %1340 = vmatmul.f32.gmra.mxu3 %v1148_v43 }
 0x295   : > { %1478 = vxpose.xlu1.b32.cont [13/16] %v5223_v60, 128 }
 0x298   : > { %2198 = vxpose.xlu0.b32.cont [13/16] %v5224_v1, 128 }
 0x29b   : > { %1275 = vmatmul.f32.gmra.mxu2 %v1147_v10 }
 0x29c   : > { %1343 = vmatmul.f32.gmra.mxu3 %v1151_v21 }
 0x29d   : > { %1479 = vxpose.xlu1.b32.cont [14/16] %v5225_v29, 128 }
 0x2a0   : > { %2200 = vxpose.xlu0.b32.cont [14/16] %v5226_v26, 128 }
 0x2a3   : > { %1278 = vmatmul.f32.gmra.mxu2 %v1150_v36 }
 0x2a4   : > { %1346 = vmatmul.f32.gmra.mxu3 %v1154_v28 }
 0x2a5   : > { %1480 = vxpose.xlu1.b32.cont [15/16] %v5227_v17, 128 }
 0x2a8   : > { %2202 = vxpose.xlu0.b32.cont [15/16] %v2201_v8, 128 }
 0x2ab   : > { %1281 = vmatmul.f32.gmra.mxu2 %v1153_v33 }
 0x2ac   : > { %1349 = vmatmul.f32.gmra.mxu3 %v1157_v6 }
 0x2ad   : > { %1481 = vxpose.xlu1.b32.end [16/16] %v5228_v34, 128 }
 0x2b0   : > { %2204 = vxpose.xlu0.b32.end [16/16] %v2203_v5, 128  ;;  %v1171_v5 = vld [vmem:[%s2962_s25 + $0xe0] sm:$0xff] }
 0x2b3   : > { %1284 = vmatmul.f32.gmra.mxu2 %v1156_v20 }
 0x2b4   : > { %1352 = vmatmul.f32.gmra.mxu3 %v1160_v7 }
 0x2bb   : > { %1287 = vmatmul.f32.gmra.mxu2 %v1159_v4 }
 0x2bc   : > { %1355 = vmatmul.f32.gmra.mxu3 %v1163_v54 }
 0x2c3   : > { %1290 = vmatmul.f32.gmra.mxu2 %v1162_v16 }
 0x2c4   : > { %1358 = vmatmul.f32.gmra.mxu3 %v1166_v11 }
 0x2cb   : > { %1293 = vmatmul.f32.gmra.mxu2 %v1165_v52 }
 0x2cc   : > { %1361 = vmatmul.f32.gmra.mxu3 %v1169_v22 }
 0x2d3   : > { %1296 = vmatmul.f32.gmra.mxu2 %v1168_v38 }
 0x2d4   : > { %1364 = vmatmul.f32.gmra.mxu3 %v1172_v9 }
 0x2d6   : > { %v4582_v41 = vpop.f32.mrf.mxu2  ;;  %v1208_v34 = vpop.f32.mrf.mxu1 }
 0x2d7   : > { %v4584_v8 = vpop.f32.mrf.mxu3 }
 0x2d9   : > { %v1482_v14 = vpop.trf.xlu1 }
 0x2da   : > { %v1499_v0 = vpack.c.bf16 %v1482_v14, %v1482_v14 }
 0x2db   : > { %1299 = vmatmul.f32.gmra.mxu2 %v1171_v5 }
 0x2dc   : > { %1367 = vmatmul.f32.gmra.mxu3 %v1175_v27  ;;  %v2205_v44 = vpop.trf.xlu0  ;;  %1531 = vst [vmem:[%s4615_s29 + $0x8] sm:$0xf] %v1499_v0 }
 0x2dd   : > { %v2209_v56 = vunpack.i.h.bf16 %v2205_v44  ;;  %v2206_v15 = vunpack.i.l.bf16 %v2205_v44 }
 0x2de   : > { %v4588_v45 = vpop.f32.mrf.mxu2 }
 0x2df   : > { %v4590_v24 = vpop.f32.mrf.mxu3  ;;  %v1498_v18 = vpack.c.bf16 %v2209_v56, %v2206_v15 }
 0x2e1   : > { %1530 = vst [vmem:[%s4615_s29] sm:$0xff] %v1498_v18  ;;  %v1483_v59 = vpop.trf.xlu1 }
 0x2e2   : > { %v1501_v37 = vpack.c.bf16 %v1483_v59, %v1483_v59 }
 0x2e3   : > { %1302 = vmatmul.f32.gmra.mxu2 %v1174_v25 }
 0x2e4   : > { %1370 = vmatmul.f32.gmra.mxu3 %v1178_v12  ;;  %v2210_v2 = vpop.trf.xlu0  ;;  %1533 = vst [vmem:[%s4615_s29 + $0x14] sm:$0xf] %v1501_v37 }
 0x2e5   : > { %v2214_v13 = vunpack.i.h.bf16 %v2210_v2  ;;  %v2211_v23 = vunpack.i.l.bf16 %v2210_v2 }
 0x2e6   : > { %v4594_v32 = vpop.f32.mrf.mxu2 }
 0x2e7   : > { %v4596_v53 = vpop.f32.mrf.mxu3  ;;  %v1500_v63 = vpack.c.bf16 %v2214_v13, %v2211_v23 }
 0x2e9   : > { %1532 = vst [vmem:[%s4615_s29 + $0xc] sm:$0xff] %v1500_v63  ;;  %v1484_v60 = vpop.trf.xlu1 }
 0x2ea   : > { %v1503_v1 = vpack.c.bf16 %v1484_v60, %v1484_v60 }
 0x2eb   : > { %1305 = vmatmul.f32.gmra.mxu2 %v1177_v62 }
 0x2ec   : > { %1373 = vmatmul.f32.gmra.mxu3 %v1181_v51  ;;  %v2215_v57 = vpop.trf.xlu0  ;;  %1535 = vst [vmem:[%s4615_s29 + $0x20] sm:$0xf] %v1503_v1 }
 0x2ed   : > { %v2219_v39 = vunpack.i.h.bf16 %v2215_v57  ;;  %v2216_v43 = vunpack.i.l.bf16 %v2215_v57 }
 0x2ee   : > { %v4600_v58 = vpop.f32.mrf.mxu2 }
 0x2ef   : > { %v4602_v19 = vpop.f32.mrf.mxu3  ;;  %v1502_v10 = vpack.c.bf16 %v2219_v39, %v2216_v43 }
 0x2f1   : > { %1534 = vst [vmem:[%s4615_s29 + $0x18] sm:$0xff] %v1502_v10  ;;  %v1485_v17 = vpop.trf.xlu1 }
 0x2f2   : > { %v1505_v33 = vpack.c.bf16 %v1485_v17, %v1485_v17 }
 0x2f3   : > { %1308 = vmatmul.f32.gmra.mxu2 %v1180_v30 }
 0x2f4   : > { %1376 = vmatmul.f32.gmra.mxu3 %v1184_v40  ;;  %v2220_v26 = vpop.trf.xlu0  ;;  %1537 = vst [vmem:[%s4615_s29 + $0x2c] sm:$0xf] %v1505_v33 }
 0x2f5   : > { %v2224_v36 = vunpack.i.h.bf16 %v2220_v26  ;;  %v2221_v28 = vunpack.i.l.bf16 %v2220_v26 }
 0x2f6   : > { %v4609_v47 = vpop.f32.mrf.mxu2 }
 0x2f7   : > { %v4611_v55 = vpop.f32.mrf.mxu3  ;;  %v1504_v6 = vpack.c.bf16 %v2224_v36, %v2221_v28 }
 0x2f9   : > { %1536 = vst [vmem:[%s4615_s29 + $0x24] sm:$0xff] %v1504_v6  ;;  %v1486_v52 = vpop.trf.xlu1 }
 0x2fa   : > { %v1507_v38 = vpack.c.bf16 %v1486_v52, %v1486_v52 }
 0x2fb   : > { %1311 = vmatmul.f32.gmra.mxu2 %v1183_v3 }
 0x2fc   : > { %1379 = vmatmul.f32.gmra.mxu3 %v1187_v31  ;;  %v2225_v54 = vpop.trf.xlu0  ;;  %1539 = vst [vmem:[%s4615_s29 + $0x38] sm:$0xf] %v1507_v38 }
 0x2fd   : > { %v2229_v16 = vunpack.i.h.bf16 %v2225_v54  ;;  %v2226_v11 = vunpack.i.l.bf16 %v2225_v54 }
 0x2fe   : > { %v4619_v50 = vpop.f32.mrf.mxu2 }
 0x2ff   : > { %v4621_v49 = vpop.f32.mrf.mxu3  ;;  %v1506_v9 = vpack.c.bf16 %v2229_v16, %v2226_v11 }
 0x301   : > { %1538 = vst [vmem:[%s4615_s29 + $0x30] sm:$0xff] %v1506_v9  ;;  %v1487_v30 = vpop.trf.xlu1 }
 0x302   : > { %v1509_v44 = vpack.c.bf16 %v1487_v30, %v1487_v30 }
 0x303   : > { %1314 = vmatmul.f32.gmra.mxu2 %v1186_v48 }
 0x304   : > { %1382 = vmatmul.f32.gmra.mxu3 %v1190_v46  ;;  %v2230_v12 = vpop.trf.xlu0  ;;  %1541 = vst [vmem:[%s4615_s29 + $0x44] sm:$0xf] %v1509_v44 }
 0x305   : > { %v2234_v62 = vunpack.i.h.bf16 %v2230_v12  ;;  %v2231_v51 = vunpack.i.l.bf16 %v2230_v12 }
 0x306   : > { %v4627_v61 = vpop.f32.mrf.mxu2 }
 0x307   : > { %v4629_v35 = vpop.f32.mrf.mxu3  ;;  %v1508_v3 = vpack.c.bf16 %v2234_v62, %v2231_v51 }
 0x309   : > { %1540 = vst [vmem:[%s4615_s29 + $0x3c] sm:$0xff] %v1508_v3  ;;  %v1488_v18 = vpop.trf.xlu1 }
 0x30a   : > { %v1511_v48 = vpack.c.bf16 %v1488_v18, %v1488_v18 }
 0x30b   : > { %1317 = vmatmul.f32.gmra.mxu2 %v1189_v42 }
 0x30c   : > { %v2235_v31 = vpop.trf.xlu0  ;;  %1543 = vst [vmem:[%s4615_s29 + $0x50] sm:$0xf] %v1511_v48 }
 0x30d   : > { %v2236_v0 = vunpack.i.l.bf16 %v2235_v31 }
 0x30e   : > { %v4634_v21 = vpop.f32.mrf.mxu2 }
 0x30f   : > { %v1338_v29 = vpop.f32.mrf.mxu3 }
 0x311   : > { %v1489_v57 = vpop.trf.xlu1 }
 0x312   : > { %v1513_v39 = vpack.c.bf16 %v1489_v57, %v1489_v57 }
 0x314   : > { %v2240_v37 = vpop.trf.xlu0  ;;  %1545 = vst [vmem:[%s4615_s29 + $0x5c] sm:$0xf] %v1513_v39 }
 0x315   : > { %v2241_v63 = vunpack.i.l.bf16 %v2240_v37 }
 0x316   : > { %v1273_v20 = vpop.f32.mrf.mxu2 }
 0x317   : > { %v1274_v7 = vadd.f32 %v1273_v20, %v1208_v34  ;;  %v1341_v4 = vpop.f32.mrf.mxu3 }
 0x319   : > { %v1339_v22 = vadd.f32 %v1338_v29, %v1274_v7  ;;  %v1490_v36 = vpop.trf.xlu1 }
 0x31a   : > { %v1515_v17 = vpack.c.bf16 %v1490_v36, %v1490_v36 }
 0x31b   : > { %1386 = vst [vmem:[%s4640_s1] sm:$0xff] %v1339_v22 }
 0x31c   : > { %v2245_v29 = vpop.trf.xlu0  ;;  %1547 = vst [vmem:[%s4615_s29 + $0x68] sm:$0xf] %v1515_v17 }
 0x31d   : > { %v2246_v26 = vunpack.i.l.bf16 %v2245_v29 }
 0x31e   : > { %v1276_v5 = vpop.f32.mrf.mxu2 }
 0x31f   : > { %v1277_v27 = vadd.f32 %v1276_v5, %v4582_v41  ;;  %v1344_v25 = vpop.f32.mrf.mxu3  ;;  %v2239_v41 = vunpack.i.h.bf16 %v2235_v31 }
 0x321   : > { %v1342_v40 = vadd.f32 %v1341_v4, %v1277_v27  ;;  %v1510_v13 = vpack.c.bf16 %v2239_v41, %v2236_v0  ;;  %v1491_v54 = vpop.trf.xlu1 }
 0x322   : > { %v1517_v11 = vpack.c.bf16 %v1491_v54, %v1491_v54 }
 0x323   : > { %1387 = vst [vmem:[%s4640_s1 + $0x8] sm:$0xff] %v1342_v40 }
 0x324   : > { %1542 = vst [vmem:[%s4615_s29 + $0x48] sm:$0xff] %v1510_v13  ;;  %v2250_v7 = vpop.trf.xlu0 }
 0x325   : > { %v2251_v4 = vunpack.i.l.bf16 %v2250_v7  ;;  %1549 = vst [vmem:[%s4615_s29 + $0x74] sm:$0xf] %v1517_v11 }
 0x326   : > { %v1279_v56 = vpop.f32.mrf.mxu2 }
 0x327   : > { %v1280_v15 = vadd.f32 %v1279_v56, %v4588_v45  ;;  %v1347_v14 = vpop.f32.mrf.mxu3  ;;  %v2244_v45 = vunpack.i.h.bf16 %v2240_v37 }
 0x329   : > { %v1345_v2 = vadd.f32 %v1344_v25, %v1280_v15  ;;  %v1512_v43 = vpack.c.bf16 %v2244_v45, %v2241_v63  ;;  %v1492_v25 = vpop.trf.xlu1 }
 0x32a   : > { %v1519_v62 = vpack.c.bf16 %v1492_v25, %v1492_v25 }
 0x32b   : > { %1388 = vst [vmem:[%s4640_s1 + $0x10] sm:$0xff] %v1345_v2 }
 0x32c   : > { %1544 = vst [vmem:[%s4615_s29 + $0x54] sm:$0xff] %v1512_v43  ;;  %v2255_v5 = vpop.trf.xlu0 }
 0x32d   : > { %v2256_v27 = vunpack.i.l.bf16 %v2255_v5  ;;  %1551 = vst [vmem:[%s4615_s29 + $0x80] sm:$0xf] %v1519_v62 }
 0x32e   : > { %v1282_v23 = vpop.f32.mrf.mxu2 }
 0x32f   : > { %v1283_v59 = vadd.f32 %v1282_v23, %v4594_v32  ;;  %v1350_v46 = vpop.f32.mrf.mxu3  ;;  %v2249_v32 = vunpack.i.h.bf16 %v2245_v29 }
 0x331   : > { %v1348_v42 = vadd.f32 %v1347_v14, %v1283_v59  ;;  %v1514_v33 = vpack.c.bf16 %v2249_v32, %v2246_v26  ;;  %v1493_v15 = vpop.trf.xlu1 }
 0x332   : > { %v1521_v31 = vpack.c.bf16 %v1493_v15, %v1493_v15 }
 0x333   : > { %1389 = vst [vmem:[%s4640_s1 + $0x18] sm:$0xff] %v1348_v42 }
 0x334   : > { %1546 = vst [vmem:[%s4615_s29 + $0x60] sm:$0xff] %v1514_v33  ;;  %v2260_v3 = vpop.trf.xlu0 }
 0x335   : > { %v2261_v56 = vunpack.i.l.bf16 %v2260_v3  ;;  %1553 = vst [vmem:[%s4615_s29 + $0x8c] sm:$0xf] %v1521_v31 }
 0x336   : > { %v1285_v60 = vpop.f32.mrf.mxu2 }
 0x337   : > { %v1286_v1 = vadd.f32 %v1285_v60, %v4600_v58  ;;  %v1353_v10 = vpop.f32.mrf.mxu3  ;;  %v2254_v58 = vunpack.i.h.bf16 %v2250_v7 }
 0x339   : > { %v1351_v28 = vadd.f32 %v1350_v46, %v1286_v1  ;;  %v1516_v52 = vpack.c.bf16 %v2254_v58, %v2251_v4  ;;  %v1494_v23 = vpop.trf.xlu1 }
 0x33a   : > { %v1523_v46 = vpack.c.bf16 %v1494_v23, %v1494_v23 }
 0x33b   : > { %1390 = vst [vmem:[%s4640_s1 + $0x20] sm:$0xff] %v1351_v28 }
 0x33c   : > { %1548 = vst [vmem:[%s4615_s29 + $0x6c] sm:$0xff] %v1516_v52 }
 0x33d   : > { %1555 = vst [vmem:[%s4615_s29 + $0x98] sm:$0xf] %v1523_v46 }
 0x33e   : > { %v1288_v6 = vpop.f32.mrf.mxu2 }
 0x33f   : > { %v1289_v34 = vadd.f32 %v1288_v6, %v4609_v47  ;;  %v1356_v20 = vpop.f32.mrf.mxu3  ;;  %v2259_v47 = vunpack.i.h.bf16 %v2255_v5 }
 0x341   : > { %v1354_v16 = vadd.f32 %v1353_v10, %v1289_v34  ;;  %v1518_v51 = vpack.c.bf16 %v2259_v47, %v2256_v27  ;;  %v1495_v43 = vpop.trf.xlu1 }
 0x342   : > { %v1525_v1 = vpack.c.bf16 %v1495_v43, %v1495_v43 }
 0x343   : > { %1391 = vst [vmem:[%s4640_s1 + $0x28] sm:$0xff] %v1354_v16 }
 0x344   : > { %1550 = vst [vmem:[%s4615_s29 + $0x78] sm:$0xff] %v1518_v51 }
 0x345   : > { %1557 = vst [vmem:[%s4615_s29 + $0xa4] sm:$0xf] %v1525_v1 }
 0x346   : > { %v1291_v22 = vpop.f32.mrf.mxu2 }
 0x347   : > { %v1292_v38 = vadd.f32 %v1291_v22, %v4619_v50  ;;  %v1359_v9 = vpop.f32.mrf.mxu3  ;;  %v2264_v50 = vunpack.i.h.bf16 %v2260_v3 }
 0x349   : > { %v1357_v12 = vadd.f32 %v1356_v20, %v1292_v38  ;;  %v1520_v41 = vpack.c.bf16 %v2264_v50, %v2261_v56  ;;  %v1496_v17 = vpop.trf.xlu1 }
 0x34a   : > { %v1527_v6 = vpack.c.bf16 %v1496_v17, %v1496_v17 }
 0x34b   : > { %1392 = vst [vmem:[%s4640_s1 + $0x30] sm:$0xff] %v1357_v12 }
 0x34c   : > { %1552 = vst [vmem:[%s4615_s29 + $0x84] sm:$0xff] %v1520_v41 }
 0x34d   : > { %1559 = vst [vmem:[%s4615_s29 + $0xb0] sm:$0xf] %v1527_v6 }
 0x34e   : > { %v1294_v30 = vpop.f32.mrf.mxu2 }
 0x34f   : > { %v1295_v40 = vadd.f32 %v1294_v30, %v4627_v61  ;;  %v1362_v44 = vpop.f32.mrf.mxu3  ;;  %v2265_v61 = vpop.trf.xlu0 }
 0x350   : > { %v2269_v48 = vunpack.i.h.bf16 %v2265_v61  ;;  %v2266_v13 = vunpack.i.l.bf16 %v2265_v61 }
 0x351   : > { %v1360_v14 = vadd.f32 %v1359_v9, %v1295_v40  ;;  %v1497_v16 = vpop.trf.xlu1 }
 0x352   : > { %v1522_v37 = vpack.c.bf16 %v2269_v48, %v2266_v13  ;;  %v1529_v52 = vpack.c.bf16 %v1497_v16, %v1497_v16 }
 0x353   : > { %1393 = vst [vmem:[%s4640_s1 + $0x38] sm:$0xff] %v1360_v14 }
 0x354   : > { %1554 = vst [vmem:[%s4615_s29 + $0x90] sm:$0xff] %v1522_v37 }
 0x355   : > { %1561 = vst [vmem:[%s4615_s29 + $0xbc] sm:$0xf] %v1529_v52 }
 0x356   : > { %v1297_v0 = vpop.f32.mrf.mxu2 }
 0x357   : > { %v1298_v18 = vadd.f32 %v1297_v0, %v4634_v21  ;;  %v1365_v2 = vpop.f32.mrf.mxu3  ;;  %v2270_v57 = vpop.trf.xlu0 }
 0x358   : > { %v2274_v42 = vunpack.i.h.bf16 %v2270_v57  ;;  %v2271_v39 = vunpack.i.l.bf16 %v2270_v57 }
 0x359   : > { %v1363_v59 = vadd.f32 %v1362_v44, %v1298_v18 }
 0x35a   : > { %v1524_v10 = vpack.c.bf16 %v2274_v42, %v2271_v39 }
 0x35b   : > { %1394 = vst [vmem:[%s4640_s1 + $0x40] sm:$0xff] %v1363_v59 }
 0x35c   : > { %1556 = vst [vmem:[%s4615_s29 + $0x9c] sm:$0xff] %v1524_v10 }
 0x35e   : > { %v1300_v45 = vpop.f32.mrf.mxu2 }
 0x35f   : > { %v1301_v21 = vadd.f32 %v1300_v45, %v4584_v8  ;;  %v1368_v63 = vpop.f32.mrf.mxu3  ;;  %v2275_v26 = vpop.trf.xlu0 }
 0x360   : > { %v2279_v36 = vunpack.i.h.bf16 %v2275_v26  ;;  %v2276_v28 = vunpack.i.l.bf16 %v2275_v26 }
 0x361   : > { %v1366_v60 = vadd.f32 %v1365_v2, %v1301_v21 }
 0x362   : > { %v1526_v34 = vpack.c.bf16 %v2279_v36, %v2276_v28 }
 0x363   : > { %1395 = vst [vmem:[%s4640_s1 + $0x48] sm:$0xff] %v1366_v60 }
 0x364   : > { %1558 = vst [vmem:[%s4615_s29 + $0xa8] sm:$0xff] %v1526_v34 }
 0x366   : > { %v1303_v29 = vpop.f32.mrf.mxu2 }
 0x367   : > { %v1304_v8 = vadd.f32 %v1303_v29, %v4590_v24  ;;  %v1371_v32 = vpop.f32.mrf.mxu3  ;;  %v2280_v7 = vpop.trf.xlu0 }
 0x368   : > { %v2284_v4 = vunpack.i.h.bf16 %v2280_v7  ;;  %v2281_v54 = vunpack.i.l.bf16 %v2280_v7 }
 0x369   : > { %v1369_v33 = vadd.f32 %v1368_v63, %v1304_v8 }
 0x36a   : > { %v1528_v22 = vpack.c.bf16 %v2284_v4, %v2281_v54 }
 0x36b   : > { %1396 = vst [vmem:[%s4640_s1 + $0x50] sm:$0xff] %v1369_v33 }
 0x36c   : > { %1560 = vst [vmem:[%s4615_s29 + $0xb4] sm:$0xff] %v1528_v22 }
 0x36e   : > { %v1306_v24 = vpop.f32.mrf.mxu2 }
 0x36f   : > { %v1307_v20 = vadd.f32 %v1306_v24, %v4596_v53  ;;  %v1374_v58 = vpop.f32.mrf.mxu3 }
 0x371   : > { %v1372_v11 = vadd.f32 %v1371_v32, %v1307_v20 }
 0x373   : > { %1397 = vst [vmem:[%s4640_s1 + $0x58] sm:$0xff] %v1372_v11 }
 0x376   : > { %v1309_v38 = vpop.f32.mrf.mxu2 }
 0x377   : > { %2432 = shalt.err (!%p2429_p11)
}
 0x378   : > { %s2620_s4 = smov 192   ;;  %s2621_s29 = smov 384   ;;  %v1310_v53 = vadd.f32 %v1309_v38, %v4602_v19  ;;  %v1377_v5 = vpop.f32.mrf.mxu3 }
 0x379   : > { %s2622_s3 = smov 12   ;;  %s1937_s18 = sshll.u32 %s5229_s11, 5 }
 0x37a   : > { %2007 = dma.vmem_to_hbm [thread:$0]  (%p2877_p3), %s1607_s12, 3072, %s1609_s17, %s1568_s14, %s2620_s4, %s2621_s29, %s2622_s3   ;;  %v1375_v9 = vadd.f32 %v1374_v58, %v1310_v53 }
 0x37b   : > { %s1579_s8 = sadd.s32 %s5230_s0, %s1937_s18  ;;  %s1929_s26 = sshll.u32 %s5231_s5, 6 }
 0x37c   : > { %1398 = vst [vmem:[%s4640_s1 + $0x60] sm:$0xff] %v1375_v9  ;;  %s1581_s15 = sadd.s32 %s1929_s26, %s1579_s8  ;;  %s5235_s12 = sld [smem:[#allocation96_spill]] }
 0x37d   : > { %s1930_s28 = sshll.u32 %s1581_s15, 3  ;;  %s5236_s24 = sld [smem:[#allocation35_spill]] }
 0x37e   : > { %v1312_v47 = vpop.f32.mrf.mxu2  ;;  %s1584_s11 = sshll.u32 %s4640_s1, 4  ;;  %s1563_s5 = scalar_lea.sflag [#allocation4], %s2935_s22  ;;  %s1585_s11 = int_to_ptr.vmem [resolvable:$true] %s1584_s11 }
 0x37f   : > { %v1313_v27 = vadd.f32 %v1312_v47, %v4611_v55 }
 0x380   : > { %v1380_v12 = vpop.f32.mrf.mxu3 }
 0x381   : > { %v1378_v25 = vadd.f32 %v1377_v5, %v1313_v27 }
 0x382   : > { %s1583_s17 = scalar_lea.hbm %s5235_s12, %s1930_s28  ;;  %s2453_s25 = scalar_lea.hbm %s5235_s12, 1024 }
 0x383   : > { %1399 = vst [vmem:[%s4640_s1 + $0x68] sm:$0xff] %v1378_v25  ;;  %s1586_s0 = sshll.u32 %s1583_s17, 4  ;;  %p5237_p3 = scmp.ne.s32.totalorder %s5236_s24, 0  ;;  %s1587_s0 = int_to_ptr.hbm [resolvable:$true] %s1586_s0 }
 0x384   : > { %s2447_s14 = sshra.s32 %s1587_s0, 4  ;;  %s2448_s14 = int_to_ptr.hbm [resolvable:$true] %s2447_s14 }
 0x385   : > { %s2449_s21 = scalar_lea.hbm %s2448_s14, 128  ;;  %p2454_p5 = scmp.lt.s32.totalorder %s2448_s14, %s5235_s12 }
 0x386   : > { %v1315_v62 = vpop.f32.mrf.mxu2  ;;  %p2450_p12 = scmp.ne.s32.totalorder %s2448_s14, %s2449_s21  ;;  %p2455_p8 = scmp.lt.s32.totalorder %s2453_s25, %s2449_s21 }
 0x387   : > { %v1316_v19 = vadd.f32 %v1315_v62, %v4621_v49 }
 0x388   : > { %v1383_v30 = vpop.f32.mrf.mxu3  ;;  %p2451_p13 = pnand %p2450_p12, %p5237_p3  ;;  %p2456_p6 = por %p2455_p8, %p2454_p5 }
 0x389   : > { %v1381_v51 = vadd.f32 %v1380_v12, %v1316_v19 }
 0x38a   : > { %p2452_p1 = pneg %p2451_p13 }
 0x38b   : > { %1400 = vst [vmem:[%s4640_s1 + $0x70] sm:$0xff] %v1381_v51 }
 0x38c   : > { %p2457_p7 = pnand %p2456_p6, %p2452_p1 }
 0x38e   : > { %v1318_v55 = vpop.f32.mrf.mxu2 }
 0x38f   : > { %v1319_v40 = vadd.f32 %v1318_v55, %v4629_v35 }
 0x391   : > { %v1384_v44 = vadd.f32 %v1383_v30, %v1319_v40 }
 0x393   : > { %1401 = vst [vmem:[%s4640_s1 + $0x78] sm:$0xff] %v1384_v44 }
 0x394   : > { %2460 = shalt.err (!%p2457_p7)
}
 0x395   : > { %s2623_s22 = smov 128   ;;  %s2624_s1 = smov 256  }
 0x396   : > { %s2625_s20 = smov 8  }
 0x397   : > { %2006 = dma.vmem_to_hbm [thread:$0]  (%p5237_p3), %s1585_s11, 2048, %s1587_s0, %s1563_s5, %s2623_s22, %s2624_s1, %s2625_s20  }
 0x398 PF: > { %s5238_s4 = sld [smem:[#allocation29_spill]] }
 0x399   : > { %s5239_s29 = sld [smem:[#allocation22_spill]] }
 0x39a   : > { %s5240_s3 = sld [smem:[#allocation36_spill]] }
 0x39e   : > { %p2031_p10 = scmp.ge.s32.totalorder %s5238_s4, 2 }
 0x39f   : > { %s1623_s18 = sand.u32 1, %s5239_s29  }
 0x3a0   : > { %p5241_p2 = scmp.ne.s32.totalorder %s5240_s3, 0  ;;  %s1624_s8 = scalar_lea.sflag [#allocation4], %s1623_s18 }
 0x3a2   : > { %p2024_p4 = pnand %p2031_p10, %p5241_p2 }
 0x3a4   : > { %p2025_p9 = pneg %p2024_p4 }
 0x3a6   : > { %2542 = dma.done.wait (%p2025_p9), %s1624_s8, 2048  }
 0x3a7   : > { %2544 = vsyncadd (%p2025_p9), %s1624_s8, 4294965248  ;;  %s5242_s26 = sld [smem:[#allocation19_spill]]  ;;  %p2027_p11 = pnand %p2031_p10, %p2886_p0 }
 0x3a9   : > { %p2028_p12 = pneg %p2027_p11 }
 0x3ad   : > { %s1633_s28 = sand.u32 1, %s5242_s26  }
 0x3ae   : > { %s1634_s6 = scalar_lea.sflag [#allocation12], %s1633_s28 }
 0x3af   : > { %2546 = dma.done.wait (%p2028_p12), %s1634_s6, 3072  }
 0x3b0   : > { %2548 = vsyncadd (%p2028_p12), %s1634_s6, 4294964224  ;;  %s31_s8 = sadd.s32 1, %s5238_s4   ;;  %s5245_s24 = sld [smem:[#allocation20_spill]] }
 0x3b1   : > { %p4742_p3 = scmp.ge.s32.totalorder %s31_s8, 10   ;;  %s5246_s20 = sld [smem:[#allocation40_spill]] }
 0x3b2   : > { %s5247_s21 = sld [smem:[#allocation21_spill]]  ;;  %s5256_s18 = smov %s2555_s19 }
 0x3b3   : > { %s5248_s17 = sld [smem:[#allocation38_spill]]  ;;  %s5258_s22 = smov %s2571_s23 }
 0x3b4   : > { %s5249_s11 = sld [smem:[#allocation23_spill]]  ;;  %s5261_s27 = smov %s2599_s30 }
 0x3b5   : > { %s5250_s25 = sld [smem:[#allocation24_spill]]  ;;  %s5262_s29 = smov %s2607_s7 }
 0x3b6   : > { %s5251_s26 = sld [smem:[#allocation39_spill]]  ;;  %s5257_s19 = smov %s5245_s24 }
 0x3b7   : > { %s5252_s28 = sld [smem:[#allocation28_spill]] }
 0x3b8   : > { %s5253_s0 = sld [smem:[#allocation32_spill]] }
 0x3b9   : > { %s5254_s6 = sld [smem:[#allocation34_spill]]  ;;  %s5259_s23 = smov %s5248_s17 }
 0x3ba   : > { %s5255_s5 = sld [smem:[#allocation37_spill]]  ;;  %s5260_s24 = smov %s5249_s11 }
 0x3bc   :  { %30 = sbr.rel (!%p4742_p3) target bundleno = 24 (0x18), region = 135 }
 0x3be   : > { %s5263_s30 = smov %s5253_s0 }
 0x3c0   : > { %s5264_s7 = smov %s5255_s5 }
 0x3c1   :  { %1640 = vsyncpa [#allocation3], 1 }
 0x3c2   :  { %1642 = vsyncpa [#allocation3 + $0x1], 1 }
 0x3c3   :  { %1643 = vsyncpa [#allocation6], 1 }
 0x3c4   :  { %1645 = vsyncpa [#allocation6 + $0x1], 1 }
 0x3c5   :  { %1646 = vsyncpa [#allocation9], 1 }
 0x3c6   :  { %1648 = vsyncpa [#allocation9 + $0x1], 1 }
 0x3c7   :  { %1649 = vsyncpa [#allocation4], 1 }
 0x3c8   :  { %1651 = vsyncpa [#allocation4 + $0x1], 1 }
 0x3c9   :  { %1652 = vsyncpa [#allocation12], 1 }
 0x3ca   :  { %1654 = vsyncpa [#allocation12 + $0x1], 1 }

</bundles_post_ra>
